<compile_context>
chip_gen: v5e
topology: v5e:2x2
jax: 0.10.0
libtpu: 0.0.40
codegen_flags: <defaults>
</compile_context>

<pallas_src>
import functools

import jax
import jax.numpy as jnp
from jax import lax
from jax.experimental import pallas as pl
from jax.experimental.pallas import tpu as pltpu

EMBED_DIM = 128
HID = 128
RATIO = 0.8
NUM_GRAPHS = 2
NODES_PER_GRAPH = 8
N_NODES = NUM_GRAPHS * NODES_PER_GRAPH
NUM_ITEMS = 20  # synthetic stand-in for df.item_id.max() + 10
NUM_LAYERS = 3


# ------------------------------ fused kernel -------------------------------

def _net_fused_kernel(x_ref, adj_ref, boh_ref, sg_ref,
                      wl_ref, wr_ref, cb_ref, p_ref,
                      w1_ref, b1_ref, w2_ref, b2_ref, w3_ref, b3_ref,
                      o_ref):
    """Entire Net forward, single invocation, everything VMEM-resident."""
    n = x_ref.shape[0]
    b = boh_ref.shape[0]
    f32 = jnp.float32

    x = x_ref[...]                      # (N, 128) embedded node features
    adj = adj_ref[...]                  # (N, N)  unnormalized 0/1 adjacency (A[dst, src])
    batch_oh = boh_ref[...]             # (B, N)  graph-membership one-hot
    same_graph = sg_ref[...]            # (N, N)  batch[i] == batch[j]

    row_i = lax.broadcasted_iota(jnp.int32, (n, n), 0)
    col_i = lax.broadcasted_iota(jnp.int32, (n, n), 1)
    eye_f = (row_i == col_i).astype(f32)
    lt_mask = col_i < row_i             # j < i  (tie-break by node index)

    def to_row(v_col):                  # (N,1) column -> (1,N) row without a transpose op
        return jnp.sum(eye_f * v_col, axis=0, keepdims=True)

    keep_col = jnp.ones((n, 1), f32)
    keep_row = jnp.ones((1, n), f32)
    acc = jnp.zeros((b, HID), f32)      # pooled x1 + x2 + x3 accumulator (stays in vregs)

    for layer in range(NUM_LAYERS):
        # ---- SAGEConv(mean) + ReLU on the kept-node subgraph ----------------
        a_l = adj * keep_col * keep_row
        deg = jnp.sum(a_l, axis=1, keepdims=True)
        a_m = a_l / jnp.maximum(deg, 1.0)
        agg = jnp.dot(a_m, x, preferred_element_type=f32)     # tiny (N,N)@(N,128); MXU-starved but cheap
        h = (jnp.dot(agg, wl_ref[layer], preferred_element_type=f32)
             + jnp.dot(x, wr_ref[layer], preferred_element_type=f32)
             + cb_ref[layer])
        h = jnp.maximum(h, 0.0)

        # ---- TopKPooling score = tanh(x @ p / ||p||); p pre-normalized ------
        score_col = jnp.tanh(jnp.sum(h * p_ref[layer], axis=1, keepdims=True))   # (N,1) VPU + lane reduce

        # ---- top-k keep mask: keep rank < 0.8 * (#kept nodes in graph) ------
        s_col = jnp.where(keep_col > 0.0, score_col, -2.0)    # tanh in (-1,1) => -2 sorts below any kept node
        s_row = to_row(s_col)
        better = ((s_row > s_col) |
                  ((s_row == s_col) & lt_mask)).astype(f32)   # better[i,j] = 1 iff j outranks i
        rank_col = jnp.sum(better * same_graph * keep_row, axis=1, keepdims=True)   # (N,1)
        n_col = jnp.sum(same_graph * keep_row, axis=1, keepdims=True)               # kept nodes in i's graph
        keep_col = keep_col * (rank_col < RATIO * n_col).astype(f32)  # == rank < ceil(0.8*n) for integer rank
        keep_row = to_row(keep_col)

        # ---- x = x[perm] * score[perm]  (masked formulation) ----------------
        x = h * (score_col * keep_col)

        # ---- global mean pool over kept nodes; accumulate x1 + x2 + x3 ------
        m = batch_oh * keep_row
        cnt = jnp.sum(m, axis=1, keepdims=True)
        m = m / jnp.maximum(cnt, 1.0)
        acc = acc + jnp.dot(m, x, preferred_element_type=f32)                      # (B,128)

    # ---- MLP head: lin1 -> ReLU -> lin2 -> ReLU -> dropout(eval: id) -> lin3 -> sigmoid
    h1 = jnp.maximum(jnp.dot(acc, w1_ref[...], preferred_element_type=f32) + b1_ref[...], 0.0)
    h2 = jnp.maximum(jnp.dot(h1, w2_ref[...], preferred_element_type=f32) + b2_ref[...], 0.0)
    logit = jnp.sum(h2 * w3_ref[...], axis=1, keepdims=True) + b3_ref[...]          # (B,1) on VPU
    out = jax.nn.sigmoid(logit)
    # lane-dense output block; wrapper slices column 0 (avoids a 1-lane masked store).
    o_ref[...] = jnp.broadcast_to(out, (b, HID))


# ------------------------------- JAX wrapper --------------------------------

def _vmem_spec():
    return pl.BlockSpec(memory_space=pltpu.MemorySpace.VMEM)


def net_forward(params, item_ids, edge_index, batch, num_graphs):
    n = item_ids.shape[0]
    # TODO(synk): the data-dependent embedding gather and the one-time dense
    # adjacency scatter from edge_index stay in JAX; everything else is fused.
    x0 = params["emb"][item_ids[:, 0]].astype(jnp.float32)                    # (N, 128)

    src, dst = edge_index[0], edge_index[1]
    adj = jnp.zeros((n, n), jnp.float32).at[dst, src].add(1.0)                # A[i, j] for edge j -> i

    batch_oh = (batch[None, :] == jnp.arange(num_graphs)[:, None]).astype(jnp.float32)  # (B, N)
    same_graph = (batch[:, None] == batch[None, :]).astype(jnp.float32)                 # (N, N)

    # pre-normalize pooling vectors once per forward (score = tanh(x.p / ||p||))
    p = params["pool_p"]                                                      # (3, 1, 128)
    p_hat = p / jnp.maximum(jnp.sqrt(jnp.sum(p * p, axis=-1, keepdims=True)), 1e-12)

    out = pl.pallas_call(
        _net_fused_kernel,
        out_shape=jax.ShapeDtypeStruct((num_graphs, HID), jnp.float32),
        in_specs=[_vmem_spec()] * 14,
        out_specs=_vmem_spec(),
    )(x0, adj, batch_oh, same_graph,
      params["conv_wl"], params["conv_wr"], params["conv_b"], p_hat,
      params["lin1_w"], params["lin1_b"], params["lin2_w"], params["lin2_b"],
      params["lin3_wT"], params["lin3_b"])

    return out[:, 0]                                                          # (B,) like .squeeze(1)


# --------------------------- params & example -------------------------------

def init_params(key):
    ks = jax.random.split(key, 12)
    w = lambda k, shape, s=0.1: (s * jax.random.normal(k, shape)).astype(jnp.float32)
    p = {"emb": w(ks[0], (NUM_ITEMS, EMBED_DIM), 1.0)}
    # stacked per-layer conv / pool params so the fused kernel indexes them statically
    p["conv_wl"] = w(ks[1], (NUM_LAYERS, HID, HID))
    p["conv_wr"] = w(ks[2], (NUM_LAYERS, HID, HID))
    p["conv_b"] = w(ks[3], (NUM_LAYERS, 1, HID))
    p["pool_p"] = w(ks[4], (NUM_LAYERS, 1, HID), 1.0)
    p["lin1_w"] = w(ks[5], (128, 128)); p["lin1_b"] = w(ks[6], (1, 128))
    p["lin2_w"] = w(ks[7], (128, 64));  p["lin2_b"] = w(ks[8], (1, 64))
    p["lin3_wT"] = w(ks[9], (1, 64));   p["lin3_b"] = w(ks[10], (1, 1))   # lin3 weight stored transposed
    return p


if __name__ == "__main__":
    root = jax.random.PRNGKey(0)
    k_params, k_items = jax.random.split(root)

    params = init_params(k_params)

    # Two graphs of 8 nodes each: bidirectional ring edges within each graph.
    ring_src = jnp.arange(NODES_PER_GRAPH, dtype=jnp.int32)
    ring_dst = (ring_src + 1) % NODES_PER_GRAPH
    src = jnp.concatenate([ring_src, ring_dst,
                           ring_src + NODES_PER_GRAPH, ring_dst + NODES_PER_GRAPH])
    dst = jnp.concatenate([ring_dst, ring_src,
                           ring_dst + NODES_PER_GRAPH, ring_src + NODES_PER_GRAPH])
    edge_index = jnp.stack([src, dst]).astype(jnp.int32)       # (2, 32)

    batch = jnp.concatenate([jnp.zeros(NODES_PER_GRAPH, jnp.int32),
                             jnp.ones(NODES_PER_GRAPH, jnp.int32)])
    item_ids = jax.random.randint(k_items, (N_NODES, 1), 0, NUM_ITEMS, dtype=jnp.int32)

    fwd = jax.jit(functools.partial(net_forward, num_graphs=NUM_GRAPHS))
    out = fwd(params, item_ids, edge_index, batch)
    out = jax.block_until_ready(out)

    assert out.shape == (NUM_GRAPHS,) and out.dtype == jnp.float32
    assert bool(jnp.all(jnp.isfinite(out)))
    assert bool(jnp.all((out >= 0.0) & (out <= 1.0)))
    print("KERNEL_OK")
</pallas_src>

<mosaic_0001>
module attributes {stable_mosaic.version = 11 : i64} {
  func.func @_net_fused_kernel(%arg0: memref<16x128xf32, #tpu.memory_space<vmem>>, %arg1: memref<16x16xf32, #tpu.memory_space<vmem>>, %arg2: memref<2x16xf32, #tpu.memory_space<vmem>>, %arg3: memref<16x16xf32, #tpu.memory_space<vmem>>, %arg4: memref<3x128x128xf32, #tpu.memory_space<vmem>>, %arg5: memref<3x128x128xf32, #tpu.memory_space<vmem>>, %arg6: memref<3x1x128xf32, #tpu.memory_space<vmem>>, %arg7: memref<3x1x128xf32, #tpu.memory_space<vmem>>, %arg8: memref<128x128xf32, #tpu.memory_space<vmem>>, %arg9: memref<1x128xf32, #tpu.memory_space<vmem>>, %arg10: memref<128x64xf32, #tpu.memory_space<vmem>>, %arg11: memref<1x64xf32, #tpu.memory_space<vmem>>, %arg12: memref<1x64xf32, #tpu.memory_space<vmem>>, %arg13: memref<1x1xf32, #tpu.memory_space<vmem>>, %arg14: memref<2x128xf32, #tpu.memory_space<vmem>>) attributes {dimension_semantics = [], scalar_prefetch = 0 : i64, scratch_operands = 0 : i64, tpu.core_type = #tpu.core_type<tc>} {
    %c0 = arith.constant 0 : index
    %c0_0 = arith.constant 0 : index
    %0 = vector.load %arg0[%c0, %c0_0] : memref<16x128xf32, #tpu.memory_space<vmem>>, vector<16x128xf32>
    %c0_1 = arith.constant 0 : index
    %c0_2 = arith.constant 0 : index
    %1 = vector.load %arg1[%c0_1, %c0_2] : memref<16x16xf32, #tpu.memory_space<vmem>>, vector<16x16xf32>
    %c0_3 = arith.constant 0 : index
    %c0_4 = arith.constant 0 : index
    %2 = vector.load %arg2[%c0_3, %c0_4] : memref<2x16xf32, #tpu.memory_space<vmem>>, vector<2x16xf32>
    %c0_5 = arith.constant 0 : index
    %c0_6 = arith.constant 0 : index
    %3 = vector.load %arg3[%c0_5, %c0_6] : memref<16x16xf32, #tpu.memory_space<vmem>>, vector<16x16xf32>
    %4 = tpu.iota {dimensions = array<i32: 0>} : vector<16x16xi32>
    %5 = tpu.iota {dimensions = array<i32: 1>} : vector<16x16xi32>
    %6 = arith.cmpi eq, %4, %5 : vector<16x16xi32>
    %7 = arith.extui %6 : vector<16x16xi1> to vector<16x16xi32>
    %8 = arith.sitofp %7 : vector<16x16xi32> to vector<16x16xf32>
    %9 = arith.cmpi slt, %5, %4 : vector<16x16xi32>
    %cst = arith.constant 1.000000e+00 : f32
    %10 = vector.broadcast %cst : f32 to vector<16x1xf32>
    %cst_7 = arith.constant 1.000000e+00 : f32
    %11 = vector.broadcast %cst_7 : f32 to vector<1x16xf32>
    %cst_8 = arith.constant 0.000000e+00 : f32
    %12 = vector.broadcast %cst_8 : f32 to vector<2x128xf32>
    %13 = vector.broadcast %10 : vector<16x1xf32> to vector<16x16xf32>
    %14 = arith.mulf %1, %13 : vector<16x16xf32>
    %15 = vector.broadcast %11 : vector<1x16xf32> to vector<16x16xf32>
    %16 = arith.mulf %14, %15 : vector<16x16xf32>
    %cst_9 = arith.constant dense<0.000000e+00> : vector<16xf32>
    %17 = vector.multi_reduction <add>, %16, %cst_9 [1] : vector<16x16xf32> to vector<16xf32>
    %18 = vector.shape_cast %17 : vector<16xf32> to vector<16x1xf32>
    %cst_10 = arith.constant 1.000000e+00 : f32
    %19 = vector.broadcast %cst_10 : f32 to vector<16x1xf32>
    %20 = arith.maximumf %18, %19 : vector<16x1xf32>
    %21 = vector.broadcast %20 : vector<16x1xf32> to vector<16x16xf32>
    %22 = arith.divf %16, %21 : vector<16x16xf32>
    %cst_11 = arith.constant dense<0.000000e+00> : vector<16x128xf32>
    %23 = tpu.matmul %22, %0, %cst_11 {dimension_numbers = #tpu.dot_dimension_numbers<[1], [0], [0], [1], [0, 0, 1, 1], [], []>} : vector<16x16xf32>, vector<16x128xf32>, vector<16x128xf32> -> vector<16x128xf32>
    %c0_12 = arith.constant 0 : index
    %c0_13 = arith.constant 0 : index
    %c0_14 = arith.constant 0 : index
    %24 = vector.load %arg4[%c0_12, %c0_13, %c0_14] : memref<3x128x128xf32, #tpu.memory_space<vmem>>, vector<1x128x128xf32>
    %25 = vector.shape_cast %24 : vector<1x128x128xf32> to vector<128x128xf32>
    %cst_15 = arith.constant dense<0.000000e+00> : vector<16x128xf32>
    %26 = tpu.matmul %23, %25, %cst_15 {dimension_numbers = #tpu.dot_dimension_numbers<[1], [0], [0], [1], [0, 0, 1, 1], [], []>} : vector<16x128xf32>, vector<128x128xf32>, vector<16x128xf32> -> vector<16x128xf32>
    %c0_16 = arith.constant 0 : index
    %c0_17 = arith.constant 0 : index
    %c0_18 = arith.constant 0 : index
    %27 = vector.load %arg5[%c0_16, %c0_17, %c0_18] : memref<3x128x128xf32, #tpu.memory_space<vmem>>, vector<1x128x128xf32>
    %28 = vector.shape_cast %27 : vector<1x128x128xf32> to vector<128x128xf32>
    %cst_19 = arith.constant dense<0.000000e+00> : vector<16x128xf32>
    %29 = tpu.matmul %0, %28, %cst_19 {dimension_numbers = #tpu.dot_dimension_numbers<[1], [0], [0], [1], [0, 0, 1, 1], [], []>} : vector<16x128xf32>, vector<128x128xf32>, vector<16x128xf32> -> vector<16x128xf32>
    %30 = arith.addf %26, %29 : vector<16x128xf32>
    %c0_20 = arith.constant 0 : index
    %c0_21 = arith.constant 0 : index
    %c0_22 = arith.constant 0 : index
    %31 = vector.load %arg6[%c0_20, %c0_21, %c0_22] : memref<3x1x128xf32, #tpu.memory_space<vmem>>, vector<1x1x128xf32>
    %32 = vector.shape_cast %31 : vector<1x1x128xf32> to vector<1x128xf32>
    %33 = vector.broadcast %32 : vector<1x128xf32> to vector<16x128xf32>
    %34 = arith.addf %30, %33 : vector<16x128xf32>
    %cst_23 = arith.constant 0.000000e+00 : f32
    %35 = vector.broadcast %cst_23 : f32 to vector<16x128xf32>
    %36 = arith.maximumf %34, %35 : vector<16x128xf32>
    %c0_24 = arith.constant 0 : index
    %c0_25 = arith.constant 0 : index
    %c0_26 = arith.constant 0 : index
    %37 = vector.load %arg7[%c0_24, %c0_25, %c0_26] : memref<3x1x128xf32, #tpu.memory_space<vmem>>, vector<1x1x128xf32>
    %38 = vector.shape_cast %37 : vector<1x1x128xf32> to vector<1x128xf32>
    %39 = vector.broadcast %38 : vector<1x128xf32> to vector<16x128xf32>
    %40 = arith.mulf %36, %39 : vector<16x128xf32>
    %cst_27 = arith.constant dense<0.000000e+00> : vector<16xf32>
    %41 = vector.multi_reduction <add>, %40, %cst_27 [1] : vector<16x128xf32> to vector<16xf32>
    %42 = vector.shape_cast %41 : vector<16xf32> to vector<16x1xf32>
    %43 = math.tanh %42 : vector<16x1xf32>
    %cst_28 = arith.constant 0.000000e+00 : f32
    %44 = vector.broadcast %cst_28 : f32 to vector<16x1xf32>
    %45 = arith.cmpf ogt, %10, %44 : vector<16x1xf32>
    %cst_29 = arith.constant -2.000000e+00 : f32
    %46 = vector.broadcast %cst_29 : f32 to vector<16x1xf32>
    %47 = arith.select %45, %43, %46 : vector<16x1xi1>, vector<16x1xf32>
    %48 = vector.broadcast %47 : vector<16x1xf32> to vector<16x16xf32>
    %49 = arith.mulf %8, %48 : vector<16x16xf32>
    %cst_30 = arith.constant dense<0.000000e+00> : vector<16xf32>
    %50 = vector.multi_reduction <add>, %49, %cst_30 [0] : vector<16x16xf32> to vector<16xf32>
    %51 = vector.shape_cast %50 : vector<16xf32> to vector<1x16xf32>
    %52 = vector.broadcast %51 : vector<1x16xf32> to vector<16x16xf32>
    %53 = vector.broadcast %47 : vector<16x1xf32> to vector<16x16xf32>
    %54 = arith.cmpf ogt, %52, %53 : vector<16x16xf32>
    %55 = vector.broadcast %51 : vector<1x16xf32> to vector<16x16xf32>
    %56 = vector.broadcast %47 : vector<16x1xf32> to vector<16x16xf32>
    %57 = arith.cmpf oeq, %55, %56 : vector<16x16xf32>
    %58 = arith.andi %57, %9 : vector<16x16xi1>
    %59 = arith.ori %54, %58 : vector<16x16xi1>
    %60 = arith.extui %59 : vector<16x16xi1> to vector<16x16xi32>
    %61 = arith.sitofp %60 : vector<16x16xi32> to vector<16x16xf32>
    %62 = arith.mulf %61, %3 : vector<16x16xf32>
    %63 = vector.broadcast %11 : vector<1x16xf32> to vector<16x16xf32>
    %64 = arith.mulf %62, %63 : vector<16x16xf32>
    %cst_31 = arith.constant dense<0.000000e+00> : vector<16xf32>
    %65 = vector.multi_reduction <add>, %64, %cst_31 [1] : vector<16x16xf32> to vector<16xf32>
    %66 = vector.shape_cast %65 : vector<16xf32> to vector<16x1xf32>
    %67 = vector.broadcast %11 : vector<1x16xf32> to vector<16x16xf32>
    %68 = arith.mulf %3, %67 : vector<16x16xf32>
    %cst_32 = arith.constant dense<0.000000e+00> : vector<16xf32>
    %69 = vector.multi_reduction <add>, %68, %cst_32 [1] : vector<16x16xf32> to vector<16xf32>
    %70 = vector.shape_cast %69 : vector<16xf32> to vector<16x1xf32>
    %cst_33 = arith.constant 8.000000e-01 : f32
    %71 = vector.broadcast %cst_33 : f32 to vector<16x1xf32>
    %72 = arith.mulf %71, %70 : vector<16x1xf32>
    %73 = arith.cmpf olt, %66, %72 : vector<16x1xf32>
    %74 = arith.extui %73 : vector<16x1xi1> to vector<16x1xi32>
    %75 = arith.sitofp %74 : vector<16x1xi32> to vector<16x1xf32>
    %76 = arith.mulf %10, %75 : vector<16x1xf32>
    %77 = vector.broadcast %76 : vector<16x1xf32> to vector<16x16xf32>
    %78 = arith.mulf %8, %77 : vector<16x16xf32>
    %cst_34 = arith.constant dense<0.000000e+00> : vector<16xf32>
    %79 = vector.multi_reduction <add>, %78, %cst_34 [0] : vector<16x16xf32> to vector<16xf32>
    %80 = vector.shape_cast %79 : vector<16xf32> to vector<1x16xf32>
    %81 = arith.mulf %43, %76 : vector<16x1xf32>
    %82 = vector.broadcast %81 : vector<16x1xf32> to vector<16x128xf32>
    %83 = arith.mulf %36, %82 : vector<16x128xf32>
    %84 = vector.broadcast %80 : vector<1x16xf32> to vector<2x16xf32>
    %85 = arith.mulf %2, %84 : vector<2x16xf32>
    %cst_35 = arith.constant dense<0.000000e+00> : vector<2xf32>
    %86 = vector.multi_reduction <add>, %85, %cst_35 [1] : vector<2x16xf32> to vector<2xf32>
    %87 = vector.shape_cast %86 : vector<2xf32> to vector<2x1xf32>
    %cst_36 = arith.constant 1.000000e+00 : f32
    %88 = vector.broadcast %cst_36 : f32 to vector<2x1xf32>
    %89 = arith.maximumf %87, %88 : vector<2x1xf32>
    %90 = vector.broadcast %89 : vector<2x1xf32> to vector<2x16xf32>
    %91 = arith.divf %85, %90 : vector<2x16xf32>
    %cst_37 = arith.constant dense<0.000000e+00> : vector<2x128xf32>
    %92 = tpu.matmul %91, %83, %cst_37 {dimension_numbers = #tpu.dot_dimension_numbers<[1], [0], [0], [1], [0, 0, 1, 1], [], []>} : vector<2x16xf32>, vector<16x128xf32>, vector<2x128xf32> -> vector<2x128xf32>
    %93 = arith.addf %12, %92 : vector<2x128xf32>
    %94 = vector.broadcast %76 : vector<16x1xf32> to vector<16x16xf32>
    %95 = arith.mulf %1, %94 : vector<16x16xf32>
    %96 = vector.broadcast %80 : vector<1x16xf32> to vector<16x16xf32>
    %97 = arith.mulf %95, %96 : vector<16x16xf32>
    %cst_38 = arith.constant dense<0.000000e+00> : vector<16xf32>
    %98 = vector.multi_reduction <add>, %97, %cst_38 [1] : vector<16x16xf32> to vector<16xf32>
    %99 = vector.shape_cast %98 : vector<16xf32> to vector<16x1xf32>
    %cst_39 = arith.constant 1.000000e+00 : f32
    %100 = vector.broadcast %cst_39 : f32 to vector<16x1xf32>
    %101 = arith.maximumf %99, %100 : vector<16x1xf32>
    %102 = vector.broadcast %101 : vector<16x1xf32> to vector<16x16xf32>
    %103 = arith.divf %97, %102 : vector<16x16xf32>
    %cst_40 = arith.constant dense<0.000000e+00> : vector<16x128xf32>
    %104 = tpu.matmul %103, %83, %cst_40 {dimension_numbers = #tpu.dot_dimension_numbers<[1], [0], [0], [1], [0, 0, 1, 1], [], []>} : vector<16x16xf32>, vector<16x128xf32>, vector<16x128xf32> -> vector<16x128xf32>
    %c1 = arith.constant 1 : index
    %c0_41 = arith.constant 0 : index
    %c0_42 = arith.constant 0 : index
    %105 = vector.load %arg4[%c1, %c0_41, %c0_42] : memref<3x128x128xf32, #tpu.memory_space<vmem>>, vector<1x128x128xf32>
    %106 = vector.shape_cast %105 : vector<1x128x128xf32> to vector<128x128xf32>
    %cst_43 = arith.constant dense<0.000000e+00> : vector<16x128xf32>
    %107 = tpu.matmul %104, %106, %cst_43 {dimension_numbers = #tpu.dot_dimension_numbers<[1], [0], [0], [1], [0, 0, 1, 1], [], []>} : vector<16x128xf32>, vector<128x128xf32>, vector<16x128xf32> -> vector<16x128xf32>
    %c1_44 = arith.constant 1 : index
    %c0_45 = arith.constant 0 : index
    %c0_46 = arith.constant 0 : index
    %108 = vector.load %arg5[%c1_44, %c0_45, %c0_46] : memref<3x128x128xf32, #tpu.memory_space<vmem>>, vector<1x128x128xf32>
    %109 = vector.shape_cast %108 : vector<1x128x128xf32> to vector<128x128xf32>
    %cst_47 = arith.constant dense<0.000000e+00> : vector<16x128xf32>
    %110 = tpu.matmul %83, %109, %cst_47 {dimension_numbers = #tpu.dot_dimension_numbers<[1], [0], [0], [1], [0, 0, 1, 1], [], []>} : vector<16x128xf32>, vector<128x128xf32>, vector<16x128xf32> -> vector<16x128xf32>
    %111 = arith.addf %107, %110 : vector<16x128xf32>
    %c1_48 = arith.constant 1 : index
    %c0_49 = arith.constant 0 : index
    %c0_50 = arith.constant 0 : index
    %112 = vector.load %arg6[%c1_48, %c0_49, %c0_50] : memref<3x1x128xf32, #tpu.memory_space<vmem>>, vector<1x1x128xf32>
    %113 = vector.shape_cast %112 : vector<1x1x128xf32> to vector<1x128xf32>
    %114 = vector.broadcast %113 : vector<1x128xf32> to vector<16x128xf32>
    %115 = arith.addf %111, %114 : vector<16x128xf32>
    %cst_51 = arith.constant 0.000000e+00 : f32
    %116 = vector.broadcast %cst_51 : f32 to vector<16x128xf32>
    %117 = arith.maximumf %115, %116 : vector<16x128xf32>
    %c1_52 = arith.constant 1 : index
    %c0_53 = arith.constant 0 : index
    %c0_54 = arith.constant 0 : index
    %118 = vector.load %arg7[%c1_52, %c0_53, %c0_54] : memref<3x1x128xf32, #tpu.memory_space<vmem>>, vector<1x1x128xf32>
    %119 = vector.shape_cast %118 : vector<1x1x128xf32> to vector<1x128xf32>
    %120 = vector.broadcast %119 : vector<1x128xf32> to vector<16x128xf32>
    %121 = arith.mulf %117, %120 : vector<16x128xf32>
    %cst_55 = arith.constant dense<0.000000e+00> : vector<16xf32>
    %122 = vector.multi_reduction <add>, %121, %cst_55 [1] : vector<16x128xf32> to vector<16xf32>
    %123 = vector.shape_cast %122 : vector<16xf32> to vector<16x1xf32>
    %124 = math.tanh %123 : vector<16x1xf32>
    %cst_56 = arith.constant 0.000000e+00 : f32
    %125 = vector.broadcast %cst_56 : f32 to vector<16x1xf32>
    %126 = arith.cmpf ogt, %76, %125 : vector<16x1xf32>
    %cst_57 = arith.constant -2.000000e+00 : f32
    %127 = vector.broadcast %cst_57 : f32 to vector<16x1xf32>
    %128 = arith.select %126, %124, %127 : vector<16x1xi1>, vector<16x1xf32>
    %129 = vector.broadcast %128 : vector<16x1xf32> to vector<16x16xf32>
    %130 = arith.mulf %8, %129 : vector<16x16xf32>
    %cst_58 = arith.constant dense<0.000000e+00> : vector<16xf32>
    %131 = vector.multi_reduction <add>, %130, %cst_58 [0] : vector<16x16xf32> to vector<16xf32>
    %132 = vector.shape_cast %131 : vector<16xf32> to vector<1x16xf32>
    %133 = vector.broadcast %132 : vector<1x16xf32> to vector<16x16xf32>
    %134 = vector.broadcast %128 : vector<16x1xf32> to vector<16x16xf32>
    %135 = arith.cmpf ogt, %133, %134 : vector<16x16xf32>
    %136 = vector.broadcast %132 : vector<1x16xf32> to vector<16x16xf32>
    %137 = vector.broadcast %128 : vector<16x1xf32> to vector<16x16xf32>
    %138 = arith.cmpf oeq, %136, %137 : vector<16x16xf32>
    %139 = arith.andi %138, %9 : vector<16x16xi1>
    %140 = arith.ori %135, %139 : vector<16x16xi1>
    %141 = arith.extui %140 : vector<16x16xi1> to vector<16x16xi32>
    %142 = arith.sitofp %141 : vector<16x16xi32> to vector<16x16xf32>
    %143 = arith.mulf %142, %3 : vector<16x16xf32>
    %144 = vector.broadcast %80 : vector<1x16xf32> to vector<16x16xf32>
    %145 = arith.mulf %143, %144 : vector<16x16xf32>
    %cst_59 = arith.constant dense<0.000000e+00> : vector<16xf32>
    %146 = vector.multi_reduction <add>, %145, %cst_59 [1] : vector<16x16xf32> to vector<16xf32>
    %147 = vector.shape_cast %146 : vector<16xf32> to vector<16x1xf32>
    %148 = vector.broadcast %80 : vector<1x16xf32> to vector<16x16xf32>
    %149 = arith.mulf %3, %148 : vector<16x16xf32>
    %cst_60 = arith.constant dense<0.000000e+00> : vector<16xf32>
    %150 = vector.multi_reduction <add>, %149, %cst_60 [1] : vector<16x16xf32> to vector<16xf32>
    %151 = vector.shape_cast %150 : vector<16xf32> to vector<16x1xf32>
    %cst_61 = arith.constant 8.000000e-01 : f32
    %152 = vector.broadcast %cst_61 : f32 to vector<16x1xf32>
    %153 = arith.mulf %152, %151 : vector<16x1xf32>
    %154 = arith.cmpf olt, %147, %153 : vector<16x1xf32>
    %155 = arith.extui %154 : vector<16x1xi1> to vector<16x1xi32>
    %156 = arith.sitofp %155 : vector<16x1xi32> to vector<16x1xf32>
    %157 = arith.mulf %76, %156 : vector<16x1xf32>
    %158 = vector.broadcast %157 : vector<16x1xf32> to vector<16x16xf32>
    %159 = arith.mulf %8, %158 : vector<16x16xf32>
    %cst_62 = arith.constant dense<0.000000e+00> : vector<16xf32>
    %160 = vector.multi_reduction <add>, %159, %cst_62 [0] : vector<16x16xf32> to vector<16xf32>
    %161 = vector.shape_cast %160 : vector<16xf32> to vector<1x16xf32>
    %162 = arith.mulf %124, %157 : vector<16x1xf32>
    %163 = vector.broadcast %162 : vector<16x1xf32> to vector<16x128xf32>
    %164 = arith.mulf %117, %163 : vector<16x128xf32>
    %165 = vector.broadcast %161 : vector<1x16xf32> to vector<2x16xf32>
    %166 = arith.mulf %2, %165 : vector<2x16xf32>
    %cst_63 = arith.constant dense<0.000000e+00> : vector<2xf32>
    %167 = vector.multi_reduction <add>, %166, %cst_63 [1] : vector<2x16xf32> to vector<2xf32>
    %168 = vector.shape_cast %167 : vector<2xf32> to vector<2x1xf32>
    %cst_64 = arith.constant 1.000000e+00 : f32
    %169 = vector.broadcast %cst_64 : f32 to vector<2x1xf32>
    %170 = arith.maximumf %168, %169 : vector<2x1xf32>
    %171 = vector.broadcast %170 : vector<2x1xf32> to vector<2x16xf32>
    %172 = arith.divf %166, %171 : vector<2x16xf32>
    %cst_65 = arith.constant dense<0.000000e+00> : vector<2x128xf32>
    %173 = tpu.matmul %172, %164, %cst_65 {dimension_numbers = #tpu.dot_dimension_numbers<[1], [0], [0], [1], [0, 0, 1, 1], [], []>} : vector<2x16xf32>, vector<16x128xf32>, vector<2x128xf32> -> vector<2x128xf32>
    %174 = arith.addf %93, %173 : vector<2x128xf32>
    %175 = vector.broadcast %157 : vector<16x1xf32> to vector<16x16xf32>
    %176 = arith.mulf %1, %175 : vector<16x16xf32>
    %177 = vector.broadcast %161 : vector<1x16xf32> to vector<16x16xf32>
    %178 = arith.mulf %176, %177 : vector<16x16xf32>
    %cst_66 = arith.constant dense<0.000000e+00> : vector<16xf32>
    %179 = vector.multi_reduction <add>, %178, %cst_66 [1] : vector<16x16xf32> to vector<16xf32>
    %180 = vector.shape_cast %179 : vector<16xf32> to vector<16x1xf32>
    %cst_67 = arith.constant 1.000000e+00 : f32
    %181 = vector.broadcast %cst_67 : f32 to vector<16x1xf32>
    %182 = arith.maximumf %180, %181 : vector<16x1xf32>
    %183 = vector.broadcast %182 : vector<16x1xf32> to vector<16x16xf32>
    %184 = arith.divf %178, %183 : vector<16x16xf32>
    %cst_68 = arith.constant dense<0.000000e+00> : vector<16x128xf32>
    %185 = tpu.matmul %184, %164, %cst_68 {dimension_numbers = #tpu.dot_dimension_numbers<[1], [0], [0], [1], [0, 0, 1, 1], [], []>} : vector<16x16xf32>, vector<16x128xf32>, vector<16x128xf32> -> vector<16x128xf32>
    %c2 = arith.constant 2 : index
    %c0_69 = arith.constant 0 : index
    %c0_70 = arith.constant 0 : index
    %186 = vector.load %arg4[%c2, %c0_69, %c0_70] : memref<3x128x128xf32, #tpu.memory_space<vmem>>, vector<1x128x128xf32>
    %187 = vector.shape_cast %186 : vector<1x128x128xf32> to vector<128x128xf32>
    %cst_71 = arith.constant dense<0.000000e+00> : vector<16x128xf32>
    %188 = tpu.matmul %185, %187, %cst_71 {dimension_numbers = #tpu.dot_dimension_numbers<[1], [0], [0], [1], [0, 0, 1, 1], [], []>} : vector<16x128xf32>, vector<128x128xf32>, vector<16x128xf32> -> vector<16x128xf32>
    %c2_72 = arith.constant 2 : index
    %c0_73 = arith.constant 0 : index
    %c0_74 = arith.constant 0 : index
    %189 = vector.load %arg5[%c2_72, %c0_73, %c0_74] : memref<3x128x128xf32, #tpu.memory_space<vmem>>, vector<1x128x128xf32>
    %190 = vector.shape_cast %189 : vector<1x128x128xf32> to vector<128x128xf32>
    %cst_75 = arith.constant dense<0.000000e+00> : vector<16x128xf32>
    %191 = tpu.matmul %164, %190, %cst_75 {dimension_numbers = #tpu.dot_dimension_numbers<[1], [0], [0], [1], [0, 0, 1, 1], [], []>} : vector<16x128xf32>, vector<128x128xf32>, vector<16x128xf32> -> vector<16x128xf32>
    %192 = arith.addf %188, %191 : vector<16x128xf32>
    %c2_76 = arith.constant 2 : index
    %c0_77 = arith.constant 0 : index
    %c0_78 = arith.constant 0 : index
    %193 = vector.load %arg6[%c2_76, %c0_77, %c0_78] : memref<3x1x128xf32, #tpu.memory_space<vmem>>, vector<1x1x128xf32>
    %194 = vector.shape_cast %193 : vector<1x1x128xf32> to vector<1x128xf32>
    %195 = vector.broadcast %194 : vector<1x128xf32> to vector<16x128xf32>
    %196 = arith.addf %192, %195 : vector<16x128xf32>
    %cst_79 = arith.constant 0.000000e+00 : f32
    %197 = vector.broadcast %cst_79 : f32 to vector<16x128xf32>
    %198 = arith.maximumf %196, %197 : vector<16x128xf32>
    %c2_80 = arith.constant 2 : index
    %c0_81 = arith.constant 0 : index
    %c0_82 = arith.constant 0 : index
    %199 = vector.load %arg7[%c2_80, %c0_81, %c0_82] : memref<3x1x128xf32, #tpu.memory_space<vmem>>, vector<1x1x128xf32>
    %200 = vector.shape_cast %199 : vector<1x1x128xf32> to vector<1x128xf32>
    %201 = vector.broadcast %200 : vector<1x128xf32> to vector<16x128xf32>
    %202 = arith.mulf %198, %201 : vector<16x128xf32>
    %cst_83 = arith.constant dense<0.000000e+00> : vector<16xf32>
    %203 = vector.multi_reduction <add>, %202, %cst_83 [1] : vector<16x128xf32> to vector<16xf32>
    %204 = vector.shape_cast %203 : vector<16xf32> to vector<16x1xf32>
    %205 = math.tanh %204 : vector<16x1xf32>
    %cst_84 = arith.constant 0.000000e+00 : f32
    %206 = vector.broadcast %cst_84 : f32 to vector<16x1xf32>
    %207 = arith.cmpf ogt, %157, %206 : vector<16x1xf32>
    %cst_85 = arith.constant -2.000000e+00 : f32
    %208 = vector.broadcast %cst_85 : f32 to vector<16x1xf32>
    %209 = arith.select %207, %205, %208 : vector<16x1xi1>, vector<16x1xf32>
    %210 = vector.broadcast %209 : vector<16x1xf32> to vector<16x16xf32>
    %211 = arith.mulf %8, %210 : vector<16x16xf32>
    %cst_86 = arith.constant dense<0.000000e+00> : vector<16xf32>
    %212 = vector.multi_reduction <add>, %211, %cst_86 [0] : vector<16x16xf32> to vector<16xf32>
    %213 = vector.shape_cast %212 : vector<16xf32> to vector<1x16xf32>
    %214 = vector.broadcast %213 : vector<1x16xf32> to vector<16x16xf32>
    %215 = vector.broadcast %209 : vector<16x1xf32> to vector<16x16xf32>
    %216 = arith.cmpf ogt, %214, %215 : vector<16x16xf32>
    %217 = vector.broadcast %213 : vector<1x16xf32> to vector<16x16xf32>
    %218 = vector.broadcast %209 : vector<16x1xf32> to vector<16x16xf32>
    %219 = arith.cmpf oeq, %217, %218 : vector<16x16xf32>
    %220 = arith.andi %219, %9 : vector<16x16xi1>
    %221 = arith.ori %216, %220 : vector<16x16xi1>
    %222 = arith.extui %221 : vector<16x16xi1> to vector<16x16xi32>
    %223 = arith.sitofp %222 : vector<16x16xi32> to vector<16x16xf32>
    %224 = arith.mulf %223, %3 : vector<16x16xf32>
    %225 = vector.broadcast %161 : vector<1x16xf32> to vector<16x16xf32>
    %226 = arith.mulf %224, %225 : vector<16x16xf32>
    %cst_87 = arith.constant dense<0.000000e+00> : vector<16xf32>
    %227 = vector.multi_reduction <add>, %226, %cst_87 [1] : vector<16x16xf32> to vector<16xf32>
    %228 = vector.shape_cast %227 : vector<16xf32> to vector<16x1xf32>
    %229 = vector.broadcast %161 : vector<1x16xf32> to vector<16x16xf32>
    %230 = arith.mulf %3, %229 : vector<16x16xf32>
    %cst_88 = arith.constant dense<0.000000e+00> : vector<16xf32>
    %231 = vector.multi_reduction <add>, %230, %cst_88 [1] : vector<16x16xf32> to vector<16xf32>
    %232 = vector.shape_cast %231 : vector<16xf32> to vector<16x1xf32>
    %cst_89 = arith.constant 8.000000e-01 : f32
    %233 = vector.broadcast %cst_89 : f32 to vector<16x1xf32>
    %234 = arith.mulf %233, %232 : vector<16x1xf32>
    %235 = arith.cmpf olt, %228, %234 : vector<16x1xf32>
    %236 = arith.extui %235 : vector<16x1xi1> to vector<16x1xi32>
    %237 = arith.sitofp %236 : vector<16x1xi32> to vector<16x1xf32>
    %238 = arith.mulf %157, %237 : vector<16x1xf32>
    %239 = vector.broadcast %238 : vector<16x1xf32> to vector<16x16xf32>
    %240 = arith.mulf %8, %239 : vector<16x16xf32>
    %cst_90 = arith.constant dense<0.000000e+00> : vector<16xf32>
    %241 = vector.multi_reduction <add>, %240, %cst_90 [0] : vector<16x16xf32> to vector<16xf32>
    %242 = vector.shape_cast %241 : vector<16xf32> to vector<1x16xf32>
    %243 = arith.mulf %205, %238 : vector<16x1xf32>
    %244 = vector.broadcast %243 : vector<16x1xf32> to vector<16x128xf32>
    %245 = arith.mulf %198, %244 : vector<16x128xf32>
    %246 = vector.broadcast %242 : vector<1x16xf32> to vector<2x16xf32>
    %247 = arith.mulf %2, %246 : vector<2x16xf32>
    %cst_91 = arith.constant dense<0.000000e+00> : vector<2xf32>
    %248 = vector.multi_reduction <add>, %247, %cst_91 [1] : vector<2x16xf32> to vector<2xf32>
    %249 = vector.shape_cast %248 : vector<2xf32> to vector<2x1xf32>
    %cst_92 = arith.constant 1.000000e+00 : f32
    %250 = vector.broadcast %cst_92 : f32 to vector<2x1xf32>
    %251 = arith.maximumf %249, %250 : vector<2x1xf32>
    %252 = vector.broadcast %251 : vector<2x1xf32> to vector<2x16xf32>
    %253 = arith.divf %247, %252 : vector<2x16xf32>
    %cst_93 = arith.constant dense<0.000000e+00> : vector<2x128xf32>
    %254 = tpu.matmul %253, %245, %cst_93 {dimension_numbers = #tpu.dot_dimension_numbers<[1], [0], [0], [1], [0, 0, 1, 1], [], []>} : vector<2x16xf32>, vector<16x128xf32>, vector<2x128xf32> -> vector<2x128xf32>
    %255 = arith.addf %174, %254 : vector<2x128xf32>
    %c0_94 = arith.constant 0 : index
    %c0_95 = arith.constant 0 : index
    %256 = vector.load %arg8[%c0_94, %c0_95] : memref<128x128xf32, #tpu.memory_space<vmem>>, vector<128x128xf32>
    %cst_96 = arith.constant dense<0.000000e+00> : vector<2x128xf32>
    %257 = tpu.matmul %255, %256, %cst_96 {dimension_numbers = #tpu.dot_dimension_numbers<[1], [0], [0], [1], [0, 0, 1, 1], [], []>} : vector<2x128xf32>, vector<128x128xf32>, vector<2x128xf32> -> vector<2x128xf32>
    %c0_97 = arith.constant 0 : index
    %c0_98 = arith.constant 0 : index
    %258 = vector.load %arg9[%c0_97, %c0_98] : memref<1x128xf32, #tpu.memory_space<vmem>>, vector<1x128xf32>
    %259 = vector.broadcast %258 : vector<1x128xf32> to vector<2x128xf32>
    %260 = arith.addf %257, %259 : vector<2x128xf32>
    %cst_99 = arith.constant 0.000000e+00 : f32
    %261 = vector.broadcast %cst_99 : f32 to vector<2x128xf32>
    %262 = arith.maximumf %260, %261 : vector<2x128xf32>
    %c0_100 = arith.constant 0 : index
    %c0_101 = arith.constant 0 : index
    %263 = vector.load %arg10[%c0_100, %c0_101] : memref<128x64xf32, #tpu.memory_space<vmem>>, vector<128x64xf32>
    %cst_102 = arith.constant dense<0.000000e+00> : vector<2x64xf32>
    %264 = tpu.matmul %262, %263, %cst_102 {dimension_numbers = #tpu.dot_dimension_numbers<[1], [0], [0], [1], [0, 0, 1, 1], [], []>} : vector<2x128xf32>, vector<128x64xf32>, vector<2x64xf32> -> vector<2x64xf32>
    %c0_103 = arith.constant 0 : index
    %c0_104 = arith.constant 0 : index
    %265 = vector.load %arg11[%c0_103, %c0_104] : memref<1x64xf32, #tpu.memory_space<vmem>>, vector<1x64xf32>
    %266 = vector.broadcast %265 : vector<1x64xf32> to vector<2x64xf32>
    %267 = arith.addf %264, %266 : vector<2x64xf32>
    %cst_105 = arith.constant 0.000000e+00 : f32
    %268 = vector.broadcast %cst_105 : f32 to vector<2x64xf32>
    %269 = arith.maximumf %267, %268 : vector<2x64xf32>
    %c0_106 = arith.constant 0 : index
    %c0_107 = arith.constant 0 : index
    %270 = vector.load %arg12[%c0_106, %c0_107] : memref<1x64xf32, #tpu.memory_space<vmem>>, vector<1x64xf32>
    %271 = vector.broadcast %270 : vector<1x64xf32> to vector<2x64xf32>
    %272 = arith.mulf %269, %271 : vector<2x64xf32>
    %cst_108 = arith.constant dense<0.000000e+00> : vector<2xf32>
    %273 = vector.multi_reduction <add>, %272, %cst_108 [1] : vector<2x64xf32> to vector<2xf32>
    %274 = vector.shape_cast %273 : vector<2xf32> to vector<2x1xf32>
    %c0_109 = arith.constant 0 : index
    %c0_110 = arith.constant 0 : index
    %275 = vector.load %arg13[%c0_109, %c0_110] : memref<1x1xf32, #tpu.memory_space<vmem>>, vector<1x1xf32>
    %276 = vector.broadcast %275 : vector<1x1xf32> to vector<2x1xf32>
    %277 = arith.addf %274, %276 : vector<2x1xf32>
    %278 = arith.negf %277 : vector<2x1xf32>
    %279 = math.exp %278 : vector<2x1xf32>
    %cst_111 = arith.constant 1.000000e+00 : f32
    %280 = vector.broadcast %cst_111 : f32 to vector<2x1xf32>
    %281 = arith.addf %280, %279 : vector<2x1xf32>
    %282 = arith.divf %280, %281 : vector<2x1xf32>
    %283 = vector.shape_cast %282 : vector<2x1xf32> to vector<2x1xf32>
    %284 = vector.broadcast %283 : vector<2x1xf32> to vector<2x128xf32>
    %c0_112 = arith.constant 0 : index
    %c0_113 = arith.constant 0 : index
    %285 = vector.load %arg14[%c0_112, %c0_113] : memref<2x128xf32, #tpu.memory_space<vmem>>, vector<2x128xf32>
    tpu.vector_store %arg14[%c0_112, %c0_113], %284 {strides = array<i32>} : memref<2x128xf32, #tpu.memory_space<vmem>>, vector<2x128xf32>,
    return
  }
}

</mosaic_0001>

<bundles_post_ra>
// kernel: net_forward.1
= control target key start
LH: loop header
LB: loop body
LE: loop exit
PB: predicated region body
PF: predicated region fallthrough
CT: control target
= control target key end

     0   :  { %vm69_vm0 = vcmask 130048   ;;  %s1990_s1 = inlined_call_operand.vmem [shape: f32[16,16], index: 1, kind: input, shape index: {}]   ;;  %s1991_s0 = inlined_call_operand.vmem [shape: f32[16,128], index: 0, kind: input, shape index: {}]   ;;  %s1992_s4 = inlined_call_operand.vmem [shape: f32[3,128,128], index: 4, kind: input, shape index: {}]   ;;  %s1993_s5 = inlined_call_operand.vmem [shape: f32[3,128,128], index: 5, kind: input, shape index: {}]   ;;  %s1994_s6 = inlined_call_operand.vmem [shape: f32[3,1,128], index: 6, kind: input, shape index: {}]   ;;  %s1995_s7 = inlined_call_operand.vmem [shape: f32[3,1,128], index: 7, kind: input, shape index: {}]   ;;  %s1996_s3 = inlined_call_operand.vmem [shape: f32[16,16], index: 3, kind: input, shape index: {}]   ;;  %s1997_s2 = inlined_call_operand.vmem [shape: f32[2,16], index: 2, kind: input, shape index: {}]   ;;  %s1998_s8 = inlined_call_operand.vmem [shape: f32[128,128], index: 8, kind: input, shape index: {}]   ;;  %s1999_s9 = inlined_call_operand.vmem [shape: f32[1,128], index: 9, kind: input, shape index: {}]   ;;  %s2000_s10 = inlined_call_operand.vmem [shape: f32[128,64], index: 10, kind: input, shape index: {}]   ;;  %s2001_s11 = inlined_call_operand.vmem [shape: f32[1,64], index: 11, kind: input, shape index: {}]   ;;  %s2002_s12 = inlined_call_operand.vmem [shape: f32[1,64], index: 12, kind: input, shape index: {}]   ;;  %s2003_s13 = inlined_call_operand.<no memory space> [shape: f32[1,1], index: 13, kind: input, shape index: {}]   ;;  %s2004_s14 = inlined_call_operand.vmem [shape: f32[2,128], index: 14, kind: output, shape index: {}]  }
   0x1   :  { %v1260_v0 = vld [vmem:[%s1990_s1] sm:$0xff]  ;;  %v1267_v2 = vld [vmem:[%s1990_s1 + $0x8] sm:$0xff]  ;;  %v152_v6 = vld [vmem:[%s1992_s4 + $0x78] sm:$0xff] }
   0x2   :  { %v70_v1 = vsel %vm69_vm0, %v1260_v0, 0.0  ;;  %v73_v3 = vsel %vm69_vm0, %v1267_v2, 0.0  ;;  %v1274_v4 = vld [vmem:[%s1991_s0 + $0x8] sm:$0xff]  ;;  %v1280_v5 = vld [vmem:[%s1991_s0] sm:$0xff]  ;;  %v151_v7 = vld [vmem:[%s1992_s4 + $0x70] sm:$0xff]  ;;  %192 = vmatpush.msra.mxu2 %v152_v6 }
   0x3   :  { %71 = vadd.xlane.f32.xlu0 %v70_v1  ;;  %128 = vmatpush.msra.mxu0 %v1274_v4  ;;  %v168_v8 = vld [vmem:[%s1993_s5 + $0x78] sm:$0xff]  ;;  %v167_v9 = vld [vmem:[%s1993_s5 + $0x70] sm:$0xff]  ;;  %v150_v11 = vld [vmem:[%s1992_s4 + $0x68] sm:$0xff] }
   0x4   :  { %169 = vmatpush.msra.mxu1 %v168_v8  ;;  %193 = vmatpush.msra.mxu2 %v151_v7  ;;  %v166_v13 = vld [vmem:[%s1993_s5 + $0x68] sm:$0xff]  ;;  %v149_v14 = vld [vmem:[%s1992_s4 + $0x60] sm:$0xff]  ;;  %v148_v16 = vld [vmem:[%s1992_s4 + $0x58] sm:$0xff] }
   0x5   :  { %129 = vmatpush.msra.mxu0 %v1280_v5  ;;  %v165_v15 = vld [vmem:[%s1993_s5 + $0x60] sm:$0xff]  ;;  %v164_v17 = vld [vmem:[%s1993_s5 + $0x58] sm:$0xff]  ;;  %v147_v18 = vld [vmem:[%s1992_s4 + $0x50] sm:$0xff] }
   0x6   :  { %170 = vmatpush.msra.mxu1 %v167_v9  ;;  %194 = vmatpush.msra.mxu2 %v150_v11  ;;  %v163_v19 = vld [vmem:[%s1993_s5 + $0x50] sm:$0xff]  ;;  %v146_v21 = vld [vmem:[%s1992_s4 + $0x48] sm:$0xff]  ;;  %v145_v26 = vld [vmem:[%s1992_s4 + $0x40] sm:$0xff] }
   0x7   :  { %v162_v24 = vld [vmem:[%s1993_s5 + $0x48] sm:$0xff]  ;;  %v161_v27 = vld [vmem:[%s1993_s5 + $0x40] sm:$0xff]  ;;  %v144_v29 = vld [vmem:[%s1992_s4 + $0x38] sm:$0xff] }
   0x8   :  { %171 = vmatpush.msra.mxu1 %v166_v13  ;;  %195 = vmatpush.msra.mxu2 %v149_v14  ;;  %v160_v31 = vld [vmem:[%s1993_s5 + $0x38] sm:$0xff]  ;;  %v143_v34 = vld [vmem:[%s1992_s4 + $0x30] sm:$0xff]  ;;  %v142_v37 = vld [vmem:[%s1992_s4 + $0x28] sm:$0xff] }
   0x9   :  { %v159_v35 = vld [vmem:[%s1993_s5 + $0x30] sm:$0xff]  ;;  %v158_v40 = vld [vmem:[%s1993_s5 + $0x28] sm:$0xff]  ;;  %v141_v43 = vld [vmem:[%s1992_s4 + $0x20] sm:$0xff] }
   0xa   :  { %172 = vmatpush.msra.mxu1 %v165_v15  ;;  %196 = vmatpush.msra.mxu2 %v148_v16  ;;  %v157_v45 = vld [vmem:[%s1993_s5 + $0x20] sm:$0xff]  ;;  %v140_v48 = vld [vmem:[%s1992_s4 + $0x18] sm:$0xff]  ;;  %v139_v52 = vld [vmem:[%s1992_s4 + $0x10] sm:$0xff] }
   0xb   :  { %74 = vadd.xlane.f32.xlu0 %v73_v3  ;;  %v138_v54 = vld [vmem:[%s1992_s4 + $0x8] sm:$0xff]  ;;  %v156_v59 = vld [vmem:[%s1993_s5 + $0x18] sm:$0xff]  ;;  %v137_v60 = vld [vmem:[%s1992_s4] sm:$0xff] }
   0xc   :  { %173 = vmatpush.msra.mxu1 %v164_v17  ;;  %197 = vmatpush.msra.mxu2 %v147_v18  ;;  %v155_v61 = vld [vmem:[%s1993_s5 + $0x10] sm:$0xff]  ;;  %v154_v62 = vld [vmem:[%s1993_s5 + $0x8] sm:$0xff]  ;;  %v153_v63 = vld [vmem:[%s1993_s5] sm:$0xff] }
   0xd   :  { %v1136_v7 = vld [vmem:[%s1994_s6] ss:$0 sm:$0xff] }
   0xe   :  { %174 = vmatpush.msra.mxu1 %v163_v19  ;;  %198 = vmatpush.msra.mxu2 %v146_v21  ;;  %v1137_v11 = vld [vmem:[%s1995_s7] ss:$0 sm:$0xff] }
   0xf   :  { %v1404_v18 = vld [vmem:[%s1996_s3] sm:$0xff] }
  0x10   :  { %175 = vmatpush.msra.mxu1 %v162_v24  ;;  %199 = vmatpush.msra.mxu2 %v145_v26  ;;  %v269_v19 = vsel %vm69_vm0, %v1404_v18, 0.0 }
  0x11   :  { %270 = vadd.xlane.f32.xlu2 %v269_v19 }
  0x12   :  { %176 = vmatpush.msra.mxu1 %v161_v27  ;;  %200 = vmatpush.msra.mxu2 %v144_v29  ;;  %v1080_v29 = vld [vmem:[%s1993_s5 + $0xf0] sm:$0xff] }
  0x14   :  { %177 = vmatpush.msra.mxu1 %v160_v31  ;;  %201 = vmatpush.msra.mxu2 %v143_v34  ;;  %v1180_v31 = vmov 0.0  }
  0x16   :  { %178 = vmatpush.msra.mxu1 %v159_v35  ;;  %202 = vmatpush.msra.mxu2 %v142_v37 }
  0x18   :  { %179 = vmatpush.msra.mxu1 %v158_v40  ;;  %203 = vmatpush.msra.mxu2 %v141_v43 }
  0x1a   :  { %180 = vmatpush.msra.mxu1 %v157_v45  ;;  %204 = vmatpush.msra.mxu2 %v140_v48 }
  0x1c   :  { %205 = vmatpush.msra.mxu2 %v139_v52  ;;  %181 = vmatpush.msra.mxu1 %v156_v59  ;;  %v1072_v59 = vld [vmem:[%s1993_s5 + $0xb0] sm:$0xff] }
  0x1e   :  { %206 = vmatpush.msra.mxu2 %v138_v54  ;;  %182 = vmatpush.msra.mxu1 %v155_v61  ;;  %v1070_v61 = vld [vmem:[%s1993_s5 + $0xa0] sm:$0xff] }
  0x20   :  { %207 = vmatpush.msra.mxu2 %v137_v60  ;;  %183 = vmatpush.msra.mxu1 %v154_v62  ;;  %v1071_v60 = vld [vmem:[%s1993_s5 + $0xa8] sm:$0xff]  ;;  %v1069_v62 = vld [vmem:[%s1993_s5 + $0x98] sm:$0xff] }
  0x22   :  { %184 = vmatpush.msra.mxu1 %v153_v63  ;;  %v1068_v63 = vld [vmem:[%s1993_s5 + $0x90] sm:$0xff] }
  0x23   :  { %185 = vmatmul.f32.vlgmr.msra.gmra.mxu1 %v1280_v5 }
  0x2b   :  { %188 = vmatmul.f32.gmra.mxu1 %v1274_v4 }
  0x76   :  { %v72_v10 = vpop.xlane.xlu0 %71 }
  0x77   :  { %v76_v12 = vmax.f32 %v72_v10, 1.0 }
  0x79   :  { %1146 = vrcp.f32 %v76_v12  ;;  %v89_v30 = vand.u32 2147483648, %v76_v12  ;;  %v87_v33 = vand.u32 2147483647, %v76_v12  ;;  %vm83_vm2 = vweird.f32 %v76_v12 }
  0x7b   :  { %v90_v39 = vor.u32 1.1754944e-38, %v89_v30  ;;  %vm88_vm4 = vcmp.eq.f32.partialorder %v87_v33, 8.507059e+37  ;;  %v1079_v33 = vld [vmem:[%s1993_s5 + $0xe8] sm:$0xff] }
  0x7e   :  { %v75_v20 = vpop.xlane.xlu0 %74 }
  0x7f   :  { %v1147_v22 = vpop.eup %1146  ;;  %v77_v23 = vmax.f32 %v75_v20, 1.0  ;;  %v1411_v20 = vld [vmem:[%s1996_s3 + $0x8] sm:$0xff] }
  0x80   :  { %v79_v25 = vmul.f32 %v1147_v22, %v76_v12  ;;  %vm84_vm1 = vweird.f32 %v1147_v22  ;;  %v272_v21 = vsel %vm69_vm0, %v1411_v20, 0.0 }
  0x81   :  { %1148 = vrcp.f32 %v77_v23  ;;  %vm85_vm3 = vmor %vm83_vm2, %vm84_vm1  ;;  %v104_v49 = vand.u32 2147483648, %v77_v23  ;;  %v102_v51 = vand.u32 2147483647, %v77_v23  ;;  %vm98_vm6 = vweird.f32 %v77_v23  ;;  %273 = vadd.xlane.f32.xlu2 %v272_v21 }
  0x82   :  { %v80_v28 = vsub.f32 1.0, %v79_v25 }
  0x83   :  { %v105_v55 = vor.u32 1.1754944e-38, %v104_v49  ;;  %vm103_vm8 = vcmp.eq.f32.partialorder %v102_v51, 8.507059e+37 }
  0x84   :  { %v81_v32 = vmul.f32 %v1147_v22, %v80_v28  ;;  %v1081_v28 = vld [vmem:[%s1993_s5 + $0xf8] sm:$0xff] }
  0x85   :  { %424 = vmatpush.msrb.mxu0 %v1081_v28 }
  0x86   :  { %v82_v36 = vadd.f32 %v1147_v22, %v81_v32 }
  0x87   :  { %v1149_v38 = vpop.eup %1148  ;;  %425 = vmatpush.msrb.mxu0 %v1080_v29 }
  0x88   :  { %v94_v41 = vmul.f32 %v1149_v38, %v77_v23  ;;  %v86_v42 = vsel %vm85_vm3, %v1147_v22, %v82_v36  ;;  %vm99_vm5 = vweird.f32 %v1149_v38  ;;  %v56_v23 = vlaneseq  ;;  %v1078_v36 = vld [vmem:[%s1993_s5 + $0xe0] sm:$0xff] }
  0x89   :  { %v91_v44 = vsel %vm88_vm4, %v90_v39, %v86_v42  ;;  %vm100_vm7 = vmor %vm98_vm6, %vm99_vm5  ;;  %426 = vmatpush.msrb.mxu0 %v1079_v33  ;;  %v1077_v39 = vld [vmem:[%s1993_s5 + $0xd8] sm:$0xff]  ;;  %v1076_v42 = vld [vmem:[%s1993_s5 + $0xd0] sm:$0xff] }
  0x8a   :  { %v95_v46 = vsub.f32 1.0, %v94_v41  ;;  %v92_v47 = vmul.f32 %v91_v44, %v1260_v0  ;;  %v1415_v24 = vshrl.u32 %v56_v23, 7  ;;  %v1417_v25 = vand.u32 127, %v56_v23  ;;  %v1075_v44 = vld [vmem:[%s1993_s5 + $0xc8] sm:$0xff] }
  0x8b   :  { %427 = vmatpush.msrb.mxu0 %v1078_v36 }
  0x8c   :  { %1042 = vmatmul.msk.f32.vlgmr.msra.gmra.mxu0 %vm69_vm0, %v92_v47  ;;  %v96_v50 = vmul.f32 %v1149_v38, %v95_v46  ;;  %v1420_v26 = vadd.s32 8, %v1415_v24  ;;  %vm61_vm9 = vcmp.eq.s32.totalorder %v1415_v24, %v1417_v25  ;;  %vm67_vm14 = vcmp.lt.s32.totalorder %v1417_v25, %v1415_v24 }
  0x8d   :  { %v1435_v32 = vsel %vm61_vm9, 1.0, %v1180_v31  ;;  %428 = vmatpush.msrb.mxu0 %v1077_v39 }
  0x8e   :  { %v97_v53 = vadd.f32 %v1149_v38, %v96_v50  ;;  %vm62_vm10 = vcmp.eq.s32.totalorder %v1420_v26, %v1417_v25  ;;  %vm68_vm11 = vcmp.lt.s32.totalorder %v1417_v25, %v1420_v26 }
  0x8f   :  { %v1441_v34 = vsel %vm62_vm10, 1.0, %v1180_v31  ;;  %429 = vmatpush.msrb.mxu0 %v1076_v42 }
  0x90   :  { %v101_v56 = vsel %vm100_vm7, %v1149_v38, %v97_v53 }
  0x91   :  { %v106_v57 = vsel %vm103_vm8, %v105_v55, %v101_v56  ;;  %430 = vmatpush.msrb.mxu0 %v1075_v44  ;;  %v1064_v44 = vld [vmem:[%s1992_s4 + $0xf0] sm:$0xff] }
  0x92   :  { %v107_v58 = vmul.f32 %v106_v57, %v1267_v2  ;;  %v1074_v57 = vld [vmem:[%s1993_s5 + $0xc0] sm:$0xff] }
  0x93   :  { %431 = vmatpush.msrb.mxu0 %v1074_v57 }
  0x94   :  { %1043 = vmatmul.msk.f32.gmra.mxu0 %vm69_vm0, %v107_v58  ;;  %v1073_v58 = vld [vmem:[%s1993_s5 + $0xb8] sm:$0xff] }
  0x95   :  { %432 = vmatpush.msrb.mxu0 %v1073_v58  ;;  %v1058_v58 = vld [vmem:[%s1992_s4 + $0xc0] sm:$0xff] }
  0x97   :  { %433 = vmatpush.msrb.mxu0 %v1072_v59 }
  0x99   :  { %434 = vmatpush.msrb.mxu0 %v1071_v60 }
  0x9b   :  { %435 = vmatpush.msrb.mxu0 %v1070_v61  ;;  %v1057_v61 = vld [vmem:[%s1992_s4 + $0xb8] sm:$0xff] }
  0x9d   :  { %436 = vmatpush.msrb.mxu0 %v1069_v62 }
  0x9f   :  { %437 = vmatpush.msrb.mxu0 %v1068_v63 }
  0xa0   :  { %v186_v6 = vpop.f32.mrf.mxu1 }
  0xa8   :  { %v189_v4 = vpop.f32.mrf.mxu1 }
 0x109   :  { %v131_v1 = vpop.f32.mrf.mxu0 }
 0x10a   :  { %208 = vmatmul.f32.vlgmr.msra.gmra.mxu2 %v131_v1  ;;  %v1067_v1 = vld [vmem:[%s1993_s5 + $0x88] sm:$0xff] }
 0x10b   :  { %438 = vmatpush.msrb.mxu0 %v1067_v1 }
 0x111   :  { %v134_v3 = vpop.f32.mrf.mxu0 }
 0x112   :  { %211 = vmatmul.f32.gmra.mxu2 %v134_v3  ;;  %v1066_v3 = vld [vmem:[%s1993_s5 + $0x80] sm:$0xff] }
 0x113   :  { %439 = vmatpush.msrb.mxu0 %v1066_v3 }
 0x18d   :  { %v209_v8 = vpop.f32.mrf.mxu2 }
 0x18e   :  { %v210_v9 = vadd.f32 %v209_v8, %v186_v6  ;;  %v271_v6 = vpop.xlane.xlu2 %270 }
 0x190   :  { %v1388_v10 = vadd.f32 %v1136_v7, %v210_v9 }
 0x192   :  { %v221_v5 = vmax.f32 %v1388_v10, 0.0 }
 0x194   :  { %v227_v12 = vmul.f32 %v1137_v11, %v221_v5 }
 0x195   :  { %v212_v13 = vpop.f32.mrf.mxu2 }
 0x196   :  { %v213_v14 = vadd.f32 %v212_v13, %v189_v4  ;;  %229 = vadd.xlane.f32.xlu1 %v227_v12 }
 0x198   :  { %v1396_v15 = vadd.f32 %v1136_v7, %v213_v14  ;;  %v274_v7 = vpop.xlane.xlu2 %273 }
 0x199   :  { %v276_v8 = vmul.f32 0.8, %v274_v7 }
 0x19a   :  { %v222_v16 = vmax.f32 %v1396_v15, 0.0 }
 0x19c   :  { %v228_v17 = vmul.f32 %v1137_v11, %v222_v16  ;;  %v275_v11 = vmul.f32 0.8, %v271_v6  ;;  %v1056_v6 = vld [vmem:[%s1992_s4 + $0xb0] sm:$0xff] }
 0x19e   :  { %231 = vadd.xlane.f32.xlu1 %v228_v17 }
 0x209   :  { %v230_v22 = vpop.xlane.xlu1 %229 }
 0x20a   :  { %1150 = vtanh.f32 %v230_v22 }
 0x210   :  { %v1432_v30 = vpop.eup %1150 }
 0x211   :  { %v232_v27 = vpop.xlane.xlu1 %231  ;;  %v238_v35 = vmul.f32 %v1432_v30, %v1435_v32 }
 0x212   :  { %1152 = vtanh.f32 %v232_v27 }
 0x213   :  { %v240_v40 = vsel %vm69_vm0, %v238_v35, 0.0 }
 0x218   :  { %v1448_v37 = vpop.eup %1152 }
 0x219   :  { %v239_v38 = vmul.f32 %v1448_v37, %v1441_v34 }
 0x21b   :  { %v241_v41 = vsel %vm69_vm0, %v239_v38, 0.0 }
 0x21c   :  { %v242_v43 = vadd.f32 %v241_v41, %v240_v40 }
 0x21e   :  { %v243_v45 = vrot.slane %v242_v43, 4 }
 0x220   :  { %v244_v46 = vadd.f32 %v243_v45, %v242_v43  ;;  %v1065_v43 = vld [vmem:[%s1992_s4 + $0xf8] sm:$0xff] }
 0x222   :  { %v245_v47 = vrot.slane %v244_v46, 2 }
 0x224   :  { %v246_v48 = vadd.f32 %v245_v47, %v244_v46 }
 0x226   :  { %v247_v49 = vrot.slane %v246_v48, 1 }
 0x228   :  { %v248_v50 = vadd.f32 %v247_v49, %v246_v48  ;;  %v1063_v49 = vld [vmem:[%s1992_s4 + $0xe8] sm:$0xff] }
 0x22a   :  { %vm250_vm12 = vcmp.gt.f32.partialorder %v248_v50, %v1448_v37  ;;  %vm252_vm13 = vcmp.eq.f32.partialorder %v248_v50, %v1448_v37  ;;  %vm251_vm15 = vcmp.eq.f32.partialorder %v248_v50, %v1432_v30  ;;  %vm249_vm2 = vcmp.gt.f32.partialorder %v248_v50, %v1432_v30  ;;  %v1062_v50 = vld [vmem:[%s1992_s4 + $0xe0] sm:$0xff] }
 0x22b   :  { %vm254_vm1 = vmand %vm252_vm13, %vm68_vm11 }
 0x22c   :  { %vm256_vm3 = vmor %vm250_vm12, %vm254_vm1 }
 0x22d   :  { %v1045_v51 = vsel %vm256_vm3, 1.0, %v1180_v31  ;;  %vm253_vm4 = vmand %vm251_vm15, %vm67_vm14 }
 0x22e   :  { %v262_v52 = vmul.f32 %v1045_v51, %v1411_v20  ;;  %vm255_vm5 = vmor %vm249_vm2, %vm253_vm4  ;;  %v1061_v51 = vld [vmem:[%s1992_s4 + $0xd8] sm:$0xff] }
 0x22f   :  { %v1044_v53 = vsel %vm255_vm5, 1.0, %v1180_v31 }
 0x230   :  { %v266_v54 = vsel %vm69_vm0, %v262_v52, 0.0  ;;  %v261_v55 = vmul.f32 %v1044_v53, %v1404_v18  ;;  %v1060_v52 = vld [vmem:[%s1992_s4 + $0xd0] sm:$0xff] }
 0x231   :  { %267 = vadd.xlane.f32.xlu1 %v266_v54  ;;  %v1059_v54 = vld [vmem:[%s1992_s4 + $0xc8] sm:$0xff] }
 0x232   :  { %v263_v56 = vsel %vm69_vm0, %v261_v55, 0.0 }
 0x233   :  { %264 = vadd.xlane.f32.xlu0 %v263_v56 }
 0x2a4   :  { %v268_v9 = vpop.xlane.xlu1 %267 }
 0x2a5   :  { %vm278_vm6 = vcmp.lt.f32.partialorder %v268_v9, %v276_v8  ;;  %v1055_v8 = vld [vmem:[%s1992_s4 + $0xa8] sm:$0xff] }
 0x2a6   :  { %v1511_v4 = vsel %vm278_vm6, 1.0, %v1180_v31  ;;  %v265_v12 = vpop.xlane.xlu0 %264 }
 0x2a7   :  { %v284_v13 = vmul.f32 %v1511_v4, %v1441_v34  ;;  %vm277_vm7 = vcmp.lt.f32.partialorder %v265_v12, %v275_v11  ;;  %v295_v14 = vmul.f32 %v1448_v37, %v1511_v4  ;;  %vm493_vm4 = vcmp.gt.f32.partialorder %v1511_v4, 0.0 }
 0x2a8   :  { %v1518_v17 = vsel %vm277_vm7, 1.0, %v1180_v31 }
 0x2a9   :  { %v286_v19 = vsel %vm69_vm0, %v284_v13, 0.0  ;;  %v283_v21 = vmul.f32 %v1518_v17, %v1435_v32  ;;  %v297_v22 = vmul.f32 %v295_v14, %v222_v16  ;;  %v294_v23 = vmul.f32 %v1432_v30, %v1518_v17  ;;  %v1054_v13 = vld [vmem:[%s1992_s4 + $0xa0] sm:$0xff] }
 0x2aa   :  { %v320_v30 = vmul.f32 %v1511_v4, %v1267_v2  ;;  %v319_v38 = vmul.f32 %v1518_v17, %v1260_v0  ;;  %vm492_vm3 = vcmp.gt.f32.partialorder %v1518_v17, 0.0 }
 0x2ab   :  { %v285_v27 = vsel %vm69_vm0, %v283_v21, 0.0  ;;  %381 = vmatpush.msra.mxu3 %v297_v22  ;;  %622 = vmatpush.msrb.mxu2 %v297_v22  ;;  %v296_v29 = vmul.f32 %v294_v23, %v221_v5  ;;  %v1053_v23 = vld [vmem:[%s1992_s4 + $0x98] sm:$0xff] }
 0x2ac   :  { %v287_v28 = vadd.f32 %v286_v19, %v285_v27 }
 0x2ad   :  { %440 = vmatmul.f32.vlgmr.msrb.gmra.mxu0 %v296_v29  ;;  %382 = vmatpush.msra.mxu3 %v296_v29 }
 0x2ae   :  { %v288_v33 = vrot.slane %v287_v28, 4  ;;  %623 = vmatpush.msrb.mxu2 %v296_v29 }
 0x2af   :  { %447 = vmatpush.msrb.mxu3 %v1065_v43 }
 0x2b0   :  { %v289_v35 = vadd.f32 %v288_v33, %v287_v28  ;;  %v1052_v28 = vld [vmem:[%s1992_s4 + $0x90] sm:$0xff]  ;;  %v1051_v33 = vld [vmem:[%s1992_s4 + $0x88] sm:$0xff] }
 0x2b1   :  { %448 = vmatpush.msrb.mxu3 %v1064_v44 }
 0x2b2   :  { %v290_v36 = vrot.slane %v289_v35, 2 }
 0x2b3   :  { %449 = vmatpush.msrb.mxu3 %v1063_v49 }
 0x2b4   :  { %v291_v37 = vadd.f32 %v290_v36, %v289_v35 }
 0x2b5   :  { %443 = vmatmul.f32.gmra.mxu0 %v297_v22  ;;  %450 = vmatpush.msrb.mxu3 %v1062_v50 }
 0x2b6   :  { %v292_v15 = vrot.slane %v291_v37, 1 }
 0x2b7   :  { %451 = vmatpush.msrb.mxu3 %v1061_v51 }
 0x2b8   :  { %v1530_v16 = vadd.f32 %v292_v15, %v291_v37  ;;  %v1050_v37 = vld [vmem:[%s1992_s4 + $0x80] sm:$0xff] }
 0x2b9   :  { %452 = vmatpush.msrb.mxu3 %v1060_v52 }
 0x2ba   :  { %v1537_v10 = vmul.f32 %v320_v30, %v1530_v16  ;;  %v321_v5 = vmul.f32 %v319_v38, %v1530_v16  ;;  %v529_v41 = vmul.f32 %v1530_v16, %v1404_v18 }
 0x2bb   :  { %453 = vmatpush.msrb.mxu3 %v1059_v54 }
 0x2bc   :  { %v326_v39 = vsel %vm69_vm0, %v1537_v10, 0.0  ;;  %v323_v40 = vsel %vm69_vm0, %v321_v5, 0.0  ;;  %v531_v42 = vsel %vm69_vm0, %v529_v41, 0.0 }
 0x2bd   :  { %327 = vadd.xlane.f32.xlu0 %v326_v39  ;;  %324 = vadd.xlane.f32.xlu2 %v323_v40 }
 0x2be   :  { %454 = vmatpush.msrb.mxu3 %v1058_v58 }
 0x2c0   :  { %455 = vmatpush.msrb.mxu3 %v1057_v61 }
 0x2c2   :  { %456 = vmatpush.msrb.mxu3 %v1056_v6  ;;  %v1119_v6 = vld [vmem:[%s1993_s5 + $0x158] sm:$0xff] }
 0x2c4   :  { %457 = vmatpush.msrb.mxu3 %v1055_v8  ;;  %v1118_v8 = vld [vmem:[%s1993_s5 + $0x150] sm:$0xff] }
 0x2c5   :  { %532 = vadd.xlane.f32.xlu0 %v531_v42 }
 0x2c6   :  { %458 = vmatpush.msrb.mxu3 %v1054_v13  ;;  %v1116_v13 = vld [vmem:[%s1993_s5 + $0x140] sm:$0xff] }
 0x2c8   :  { %459 = vmatpush.msrb.mxu3 %v1053_v23 }
 0x2ca   :  { %460 = vmatpush.msrb.mxu3 %v1052_v28 }
 0x2cc   :  { %461 = vmatpush.msrb.mxu3 %v1051_v33 }
 0x2ce   :  { %462 = vmatpush.msrb.mxu3 %v1050_v37 }
 0x32a   :  { %v441_v38 = vpop.f32.mrf.mxu0 }
 0x330   :  { %v328_v45 = vpop.xlane.xlu0 %327  ;;  %v325_v46 = vpop.xlane.xlu2 %324 }
 0x331   :  { %v330_v47 = vmax.f32 %v328_v45, 1.0  ;;  %v329_v48 = vmax.f32 %v325_v46, 1.0 }
 0x332   :  { %v444_v44 = vpop.f32.mrf.mxu0 }
 0x333   :  { %1154 = vrcp.f32 %v330_v47  ;;  %v342_v62 = vand.u32 2147483648, %v329_v48  ;;  %v340_v1 = vand.u32 2147483647, %v329_v48  ;;  %vm336_vm9 = vweird.f32 %v329_v48 }
 0x334   :  { %1156 = vrcp.f32 %v329_v48  ;;  %v357_v19 = vand.u32 2147483648, %v330_v47  ;;  %vm351_vm15 = vweird.f32 %v330_v47  ;;  %v355_v22 = vand.u32 2147483647, %v330_v47 }
 0x335   :  { %v343_v9 = vor.u32 1.1754944e-38, %v342_v62  ;;  %vm341_vm12 = vcmp.eq.f32.partialorder %v340_v1, 8.507059e+37 }
 0x336   :  { %v358_v29 = vor.u32 1.1754944e-38, %v357_v19  ;;  %vm356_vm2 = vcmp.eq.f32.partialorder %v355_v22, 8.507059e+37  ;;  %v1115_v19 = vld [vmem:[%s1993_s5 + $0x138] sm:$0xff]  ;;  %v1114_v22 = vld [vmem:[%s1993_s5 + $0x130] sm:$0xff] }
 0x339   :  { %v1155_v53 = vpop.eup %1154 }
 0x33a   :  { %v1157_v55 = vpop.eup %1156  ;;  %v347_v56 = vmul.f32 %v1155_v53, %v330_v47  ;;  %vm352_vm13 = vweird.f32 %v1155_v53 }
 0x33b   :  { %v332_v57 = vmul.f32 %v1157_v55, %v329_v48  ;;  %vm337_vm8 = vweird.f32 %v1157_v55  ;;  %vm353_vm1 = vmor %vm351_vm15, %vm352_vm13  ;;  %v530_v48 = vmul.f32 %v1530_v16, %v1411_v20 }
 0x33c   :  { %v348_v59 = vsub.f32 1.0, %v347_v56  ;;  %vm338_vm10 = vmor %vm336_vm9, %vm337_vm8  ;;  %v1123_v56 = vld [vmem:[%s1993_s5 + $0x178] sm:$0xff] }
 0x33d   :  { %v333_v60 = vsub.f32 1.0, %v332_v57  ;;  %v534_v51 = vsel %vm69_vm0, %v530_v48, 0.0  ;;  %v1122_v57 = vld [vmem:[%s1993_s5 + $0x170] sm:$0xff] }
 0x33e   :  { %v349_v3 = vmul.f32 %v1155_v53, %v348_v59 }
 0x33f   :  { %v334_v63 = vmul.f32 %v1157_v55, %v333_v60  ;;  %v1121_v60 = vld [vmem:[%s1993_s5 + $0x168] sm:$0xff] }
 0x340   :  { %v350_v12 = vadd.f32 %v1155_v53, %v349_v3 }
 0x341   :  { %v335_v7 = vadd.f32 %v1157_v55, %v334_v63  ;;  %v1120_v63 = vld [vmem:[%s1993_s5 + $0x160] sm:$0xff] }
 0x342   :  { %v354_v27 = vsel %vm353_vm1, %v1155_v53, %v350_v12 }
 0x343   :  { %v339_v11 = vsel %vm338_vm10, %v1157_v55, %v335_v7  ;;  %v359_v35 = vsel %vm356_vm2, %v358_v29, %v354_v27  ;;  %v1113_v27 = vld [vmem:[%s1993_s5 + $0x128] sm:$0xff]  ;;  %v1112_v29 = vld [vmem:[%s1993_s5 + $0x120] sm:$0xff]  ;;  %vm299_vm2 = vcmask 123904  }
 0x344   :  { %v344_v14 = vsel %vm341_vm12, %v343_v9, %v339_v11  ;;  %v360_v36 = vmul.f32 %v359_v35, %v1537_v10  ;;  %v1139_v10 = vld [vmem:[%s1995_s7 + $0x1] ss:$0 sm:$0xff]  ;;  %v1117_v11 = vld [vmem:[%s1993_s5 + $0x148] sm:$0xff] }
 0x345   :  { %v345_v21 = vmul.f32 %v344_v14, %v321_v5  ;;  %v1138_v5 = vld [vmem:[%s1994_s6 + $0x1] ss:$0 sm:$0xff] }
 0x347   :  { %1048 = vmatmul.msk.f32.vlgmr.msra.gmra.mxu3 %vm69_vm0, %v345_v21 }
 0x348   :  { %733 = vmatpush.msra.mxu3 %v1123_v56 }
 0x34a   :  { %734 = vmatpush.msra.mxu3 %v1122_v57 }
 0x34c   :  { %735 = vmatpush.msra.mxu3 %v1121_v60 }
 0x34e   :  { %736 = vmatpush.msra.mxu3 %v1120_v63 }
 0x34f   :  { %1049 = vmatmul.msk.f32.gmra.mxu3 %vm69_vm0, %v360_v36 }
 0x350   :  { %737 = vmatpush.msra.mxu3 %v1119_v6 }
 0x352   :  { %738 = vmatpush.msra.mxu3 %v1118_v8 }
 0x354   :  { %739 = vmatpush.msra.mxu3 %v1117_v11 }
 0x356   :  { %740 = vmatpush.msra.mxu3 %v1116_v13 }
 0x358   :  { %741 = vmatpush.msra.mxu3 %v1115_v19  ;;  %v1107_v19 = vld [vmem:[%s1992_s4 + $0x178] sm:$0xff] }
 0x35a   :  { %742 = vmatpush.msra.mxu3 %v1114_v22 }
 0x35c   :  { %743 = vmatpush.msra.mxu3 %v1113_v27 }
 0x35e   :  { %744 = vmatpush.msra.mxu3 %v1112_v29  ;;  %v1105_v29 = vld [vmem:[%s1992_s4 + $0x168] sm:$0xff] }
 0x3ca   :  { %v384_v15 = vpop.f32.mrf.mxu3 }
 0x3cb   :  { %463 = vmatmul.f32.vlgmr.msrb.gmra.mxu3 %v384_v15 }
 0x3d2   :  { %v387_v30 = vpop.f32.mrf.mxu3 }
 0x3d3   :  { %466 = vmatmul.f32.gmra.mxu3 %v387_v30 }
 0x44e   :  { %v464_v39 = vpop.f32.mrf.mxu3 }
 0x44f   :  { %v465_v40 = vadd.f32 %v464_v39, %v441_v38  ;;  %v1111_v39 = vld [vmem:[%s1993_s5 + $0x118] sm:$0xff] }
 0x450   :  { %745 = vmatpush.msra.mxu3 %v1111_v39 }
 0x451   :  { %v1600_v41 = vadd.f32 %v1138_v5, %v465_v40  ;;  %v1110_v40 = vld [vmem:[%s1993_s5 + $0x110] sm:$0xff] }
 0x452   :  { %746 = vmatpush.msra.mxu3 %v1110_v40 }
 0x453   :  { %v477_v42 = vmax.f32 %v1600_v41, 0.0  ;;  %v1721_v41 = vld [vmem:[%s1997_s2] sm:$0x3] }
 0x455   :  { %v484_v43 = vmul.f32 %v1139_v10, %v477_v42 }
 0x456   :  { %v467_v45 = vpop.f32.mrf.mxu3 }
 0x457   :  { %v468_v46 = vadd.f32 %v467_v45, %v444_v44  ;;  %486 = vadd.xlane.f32.xlu1 %v484_v43  ;;  %v1108_v43 = vld [vmem:[%s1993_s5 + $0x100] sm:$0xff]  ;;  %v533_v44 = vpop.xlane.xlu0 %532 }
 0x459   :  { %v1608_v47 = vadd.f32 %v1138_v5, %v468_v46 }
 0x45b   :  { %v478_v49 = vmax.f32 %v1608_v47, 0.0 }
 0x45d   :  { %v485_v50 = vmul.f32 %v1139_v10, %v478_v49  ;;  %v1109_v10 = vld [vmem:[%s1993_s5 + $0x108] sm:$0xff] }
 0x45e   :  { %747 = vmatpush.msra.mxu3 %v1109_v10 }
 0x45f   :  { %488 = vadd.xlane.f32.xlu2 %v485_v50  ;;  %535 = vadd.xlane.f32.xlu1 %v534_v51  ;;  %v537_v50 = vmul.f32 0.8, %v533_v44 }
 0x460   :  { %748 = vmatpush.msra.mxu3 %v1108_v43  ;;  %v1100_v43 = vld [vmem:[%s1992_s4 + $0x140] sm:$0xff] }
 0x4ca   :  { %v487_v52 = vpop.xlane.xlu1 %486 }
 0x4cb   :  { %1158 = vtanh.f32 %v487_v52 }
 0x4d1   :  { %v1616_v54 = vpop.eup %1158 }
 0x4d2   :  { %v489_v53 = vpop.xlane.xlu2 %488  ;;  %v494_v55 = vsel %vm492_vm3, %v1616_v54, -2.0  ;;  %v536_v45 = vpop.xlane.xlu1 %535 }
 0x4d3   :  { %1160 = vtanh.f32 %v489_v53  ;;  %v496_v59 = vmul.f32 %v1435_v32, %v494_v55  ;;  %v538_v46 = vmul.f32 0.8, %v536_v45 }
 0x4d5   :  { %v498_v1 = vsel %vm69_vm0, %v496_v59, 0.0 }
 0x4d9   :  { %v1626_v58 = vpop.eup %1160 }
 0x4da   :  { %v495_v61 = vsel %vm493_vm4, %v1626_v58, -2.0 }
 0x4db   :  { %v497_v62 = vmul.f32 %v1441_v34, %v495_v61 }
 0x4dd   :  { %v499_v3 = vsel %vm69_vm0, %v497_v62, 0.0 }
 0x4de   :  { %v500_v7 = vadd.f32 %v499_v3, %v498_v1 }
 0x4e0   :  { %v501_v9 = vrot.slane %v500_v7, 4 }
 0x4e2   :  { %v502_v12 = vadd.f32 %v501_v9, %v500_v7 }
 0x4e4   :  { %v503_v14 = vrot.slane %v502_v12, 2 }
 0x4e6   :  { %v504_v21 = vadd.f32 %v503_v14, %v502_v12 }
 0x4e8   :  { %v505_v23 = vrot.slane %v504_v21, 1 }
 0x4ea   :  { %v506_v28 = vadd.f32 %v505_v23, %v504_v21  ;;  %v1106_v21 = vld [vmem:[%s1992_s4 + $0x170] sm:$0xff] }
 0x4ec   :  { %vm508_vm5 = vcmp.gt.f32.partialorder %v506_v28, %v495_v61  ;;  %vm510_vm6 = vcmp.eq.f32.partialorder %v506_v28, %v495_v61  ;;  %vm509_vm7 = vcmp.eq.f32.partialorder %v506_v28, %v494_v55  ;;  %vm507_vm9 = vcmp.gt.f32.partialorder %v506_v28, %v494_v55 }
 0x4ed   :  { %vm512_vm8 = vmand %vm510_vm6, %vm68_vm11 }
 0x4ee   :  { %vm514_vm10 = vmor %vm508_vm5, %vm512_vm8 }
 0x4ef   :  { %v1085_v33 = vsel %vm514_vm10, 1.0, %v1180_v31  ;;  %vm511_vm12 = vmand %vm509_vm7, %vm67_vm14 }
 0x4f0   :  { %v520_v35 = vmul.f32 %v1085_v33, %v1411_v20  ;;  %vm513_vm13 = vmor %vm507_vm9, %vm511_vm12 }
 0x4f1   :  { %v1084_v36 = vsel %vm513_vm13, 1.0, %v1180_v31 }
 0x4f2   :  { %v522_v37 = vmul.f32 %v520_v35, %v1530_v16  ;;  %v519_v15 = vmul.f32 %v1084_v36, %v1404_v18  ;;  %v1104_v36 = vld [vmem:[%s1992_s4 + $0x160] sm:$0xff] }
 0x4f4   :  { %v526_v30 = vsel %vm69_vm0, %v522_v37, 0.0  ;;  %v521_v38 = vmul.f32 %v519_v15, %v1530_v16  ;;  %v1103_v37 = vld [vmem:[%s1992_s4 + $0x158] sm:$0xff]  ;;  %v1102_v15 = vld [vmem:[%s1992_s4 + $0x150] sm:$0xff] }
 0x4f5   :  { %527 = vadd.xlane.f32.xlu0 %v526_v30 }
 0x4f6   :  { %v523_v5 = vsel %vm69_vm0, %v521_v38, 0.0  ;;  %v1101_v38 = vld [vmem:[%s1992_s4 + $0x148] sm:$0xff] }
 0x4f7   :  { %524 = vadd.xlane.f32.xlu2 %v523_v5 }
 0x568   :  { %v528_v48 = vpop.xlane.xlu0 %527 }
 0x569   :  { %vm540_vm15 = vcmp.lt.f32.partialorder %v528_v48, %v538_v46  ;;  %v1099_v48 = vld [vmem:[%s1992_s4 + $0x138] sm:$0xff] }
 0x56a   :  { %v1087_v51 = vsel %vm540_vm15, 1.0, %v1180_v31  ;;  %v525_v52 = vpop.xlane.xlu2 %524 }
 0x56b   :  { %v1692_v53 = vmul.f32 %v1087_v51, %v1511_v4  ;;  %vm539_vm1 = vcmp.lt.f32.partialorder %v525_v52, %v537_v50 }
 0x56c   :  { %v1086_v55 = vsel %vm539_vm1, 1.0, %v1180_v31 }
 0x56d   :  { %v548_v56 = vmul.f32 %v1441_v34, %v1692_v53  ;;  %v1698_v57 = vmul.f32 %v1086_v55, %v1518_v17  ;;  %v559_v59 = vmul.f32 %v1626_v58, %v1692_v53 }
 0x56f   :  { %v550_v60 = vsel %vm69_vm0, %v548_v56, 0.0  ;;  %v547_v61 = vmul.f32 %v1435_v32, %v1698_v57  ;;  %v561_v4 = vmul.f32 %v559_v59, %v478_v49  ;;  %v558_v62 = vmul.f32 %v1616_v54, %v1698_v57 }
 0x570   :  { %v629_v54 = vmul.f32 %v1692_v53, %v1267_v2  ;;  %v628_v8 = vmul.f32 %v1698_v57, %v1260_v0 }
 0x571   :  { %v549_v63 = vsel %vm69_vm0, %v547_v61, 0.0  ;;  %599 = vmatpush.msrb.mxu1 %v561_v4  ;;  %690 = vmatpush.msra.mxu0 %v561_v4  ;;  %v560_v17 = vmul.f32 %v558_v62, %v477_v42 }
 0x572   :  { %v551_v1 = vadd.f32 %v550_v60, %v549_v63  ;;  %v1098_v60 = vld [vmem:[%s1992_s4 + $0x130] sm:$0xff]  ;;  %v1097_v63 = vld [vmem:[%s1992_s4 + $0x128] sm:$0xff] }
 0x573   :  { %749 = vmatmul.f32.vlgmr.msra.gmra.mxu3 %v560_v17  ;;  %600 = vmatpush.msrb.mxu1 %v560_v17 }
 0x574   :  { %v552_v58 = vrot.slane %v551_v1, 4  ;;  %691 = vmatpush.msra.mxu0 %v560_v17 }
 0x575   :  { %756 = vmatpush.msra.mxu1 %v1107_v19 }
 0x576   :  { %v553_v3 = vadd.f32 %v552_v58, %v551_v1 }
 0x577   :  { %757 = vmatpush.msra.mxu1 %v1106_v21 }
 0x578   :  { %v554_v6 = vrot.slane %v553_v3, 2 }
 0x579   :  { %758 = vmatpush.msra.mxu1 %v1105_v29 }
 0x57a   :  { %v555_v7 = vadd.f32 %v554_v6, %v553_v3 }
 0x57b   :  { %752 = vmatmul.f32.gmra.mxu3 %v561_v4  ;;  %759 = vmatpush.msra.mxu1 %v1104_v36  ;;  %v1140_v36 = vld [vmem:[%s1994_s6 + $0x2] ss:$0 sm:$0xff] }
 0x57c   :  { %v556_v47 = vrot.slane %v555_v7, 1 }
 0x57d   :  { %760 = vmatpush.msra.mxu1 %v1103_v37 }
 0x57e   :  { %v1712_v49 = vadd.f32 %v556_v47, %v555_v7  ;;  %v1096_v7 = vld [vmem:[%s1992_s4 + $0x120] sm:$0xff] }
 0x57f   :  { %761 = vmatpush.msra.mxu1 %v1102_v15 }
 0x580   :  { %v1724_v42 = vmul.f32 %v629_v54, %v1712_v49  ;;  %v1727_v9 = vmul.f32 %v628_v8, %v1712_v49  ;;  %v1731_v11 = vmul.f32 %v1712_v49, %v1721_v41  ;;  %v838_v13 = vmul.f32 %v1712_v49, %v1404_v18 }
 0x581   :  { %762 = vmatpush.msra.mxu1 %v1101_v38 }
 0x582   :  { %v635_v2 = vsel %vm69_vm0, %v1724_v42, 0.0  ;;  %v632_v0 = vsel %vm69_vm0, %v1727_v9, 0.0  ;;  %v563_v12 = vsel %vm299_vm2, %v1731_v11, 0.0  ;;  %v840_v14 = vsel %vm69_vm0, %v838_v13, 0.0 }
 0x583   :  { %636 = vadd.xlane.f32.xlu2 %v635_v2  ;;  %633 = vadd.xlane.f32.xlu1 %v632_v0 }
 0x584   :  { %564 = vadd.xlane.f32.xlu0 %v563_v12  ;;  %763 = vmatpush.msra.mxu1 %v1100_v43 }
 0x586   :  { %764 = vmatpush.msra.mxu1 %v1099_v48 }
 0x588   :  { %765 = vmatpush.msra.mxu1 %v1098_v60 }
 0x58a   :  { %766 = vmatpush.msra.mxu1 %v1097_v63 }
 0x58c   :  { %841 = vadd.xlane.f32.xlu0 %v840_v14  ;;  %767 = vmatpush.msra.mxu1 %v1096_v7  ;;  %v1095_v14 = vld [vmem:[%s1992_s4 + $0x118] sm:$0xff] }
 0x58e   :  { %768 = vmatpush.msra.mxu1 %v1095_v14 }
 0x5f6   :  { %v637_v22 = vpop.xlane.xlu2 %636  ;;  %v634_v27 = vpop.xlane.xlu1 %633 }
 0x5f7   :  { %v1748_v23 = vmax.f32 %v637_v22, 1.0  ;;  %v565_v28 = vpop.xlane.xlu0 %564  ;;  %v638_v33 = vmax.f32 %v634_v27, 1.0  ;;  %v1093_v22 = vld [vmem:[%s1992_s4 + $0x108] sm:$0xff]  ;;  %v1092_v27 = vld [vmem:[%s1992_s4 + $0x100] sm:$0xff] }
 0x5f8   :  { %v566_v35 = vmax.f32 %v565_v28, 1.0 }
 0x5f9   :  { %1162 = vrcp.f32 %v1748_v23  ;;  %v649_v50 = vand.u32 2147483647, %v638_v33  ;;  %v651_v51 = vand.u32 2147483648, %v638_v33  ;;  %vm645_vm5 = vweird.f32 %v638_v33 }
 0x5fa   :  { %1164 = vrcp.f32 %v638_v33  ;;  %v578_v56 = vand.u32 2147483648, %v566_v35  ;;  %v576_v4 = vand.u32 2147483647, %v566_v35  ;;  %vm572_vm8 = vweird.f32 %v566_v35 }
 0x5fb   :  { %1166 = vrcp.f32 %v566_v35  ;;  %vm650_vm7 = vcmp.eq.f32.partialorder %v649_v50, 8.507059e+37  ;;  %v652_v17 = vor.u32 1.1754944e-38, %v651_v51  ;;  %v666_v8 = vand.u32 2147483648, %v1748_v23 }
 0x5fc   :  { %v579_v58 = vor.u32 1.1754944e-38, %v578_v56  ;;  %vm577_vm12 = vcmp.eq.f32.partialorder %v576_v4, 8.507059e+37  ;;  %vm660_vm13 = vweird.f32 %v1748_v23  ;;  %v664_v12 = vand.u32 2147483647, %v1748_v23 }
 0x5fd   :  { %v667_v21 = vor.u32 1.1754944e-38, %v666_v8  ;;  %v298_v50 = vmul.f32 %v1530_v16, %v1721_v41 }
 0x5fe   :  { %vm665_vm1 = vcmp.eq.f32.partialorder %v664_v12, 8.507059e+37 }
 0x5ff   :  { %v1763_v30 = vpop.eup %1162  ;;  %v300_v51 = vsel %vm299_vm2, %v298_v50, 0.0  ;;  %v842_v24 = vpop.xlane.xlu0 %841 }
 0x600   :  { %v1165_v5 = vpop.eup %1164  ;;  %v656_v39 = vmul.f32 %v1763_v30, %v1748_v23  ;;  %vm661_vm10 = vweird.f32 %v1763_v30 }
 0x601   :  { %v1167_v40 = vpop.eup %1166  ;;  %v641_v10 = vmul.f32 %v1165_v5, %v638_v33  ;;  %vm646_vm3 = vweird.f32 %v1165_v5  ;;  %vm662_vm15 = vmor %vm660_vm13, %vm661_vm10 }
 0x602   :  { %v657_v44 = vsub.f32 1.0, %v656_v39  ;;  %v568_v45 = vmul.f32 %v1167_v40, %v566_v35  ;;  %vm573_vm4 = vweird.f32 %v1167_v40  ;;  %vm647_vm6 = vmor %vm645_vm5, %vm646_vm3  ;;  %v750_v35 = vpop.f32.mrf.mxu3  ;;  %vm801_vm3 = vcmp.gt.f32.partialorder %v1698_v57, 0.0 }
 0x603   :  { %v642_v46 = vsub.f32 1.0, %v641_v10  ;;  %vm574_vm9 = vmor %vm572_vm8, %vm573_vm4  ;;  %vm802_vm4 = vcmp.gt.f32.partialorder %v1692_v53, 0.0 }
 0x604   :  { %v569_v52 = vsub.f32 1.0, %v568_v45  ;;  %v658_v59 = vmul.f32 %v1763_v30, %v657_v44  ;;  %v839_v44 = vmul.f32 %v1712_v49, %v1411_v20 }
 0x605   :  { %v643_v55 = vmul.f32 %v1165_v5, %v642_v46 }
 0x606   :  { %v570_v61 = vmul.f32 %v1167_v40, %v569_v52  ;;  %v659_v6 = vadd.f32 %v1763_v30, %v658_v59  ;;  %v843_v48 = vsel %vm69_vm0, %v839_v44, 0.0 }
 0x607   :  { %v644_v62 = vadd.f32 %v1165_v5, %v643_v55 }
 0x608   :  { %v571_v1 = vadd.f32 %v1167_v40, %v570_v61  ;;  %v663_v19 = vsel %vm662_vm15, %v1763_v30, %v659_v6  ;;  %v1141_v30 = vld [vmem:[%s1995_s7 + $0x2] ss:$0 sm:$0xff] }
 0x609   :  { %v648_v3 = vsel %vm647_vm6, %v1165_v5, %v644_v62 }
 0x60a   :  { %v575_v47 = vsel %vm574_vm9, %v1167_v40, %v571_v1  ;;  %v653_v54 = vsel %vm650_vm7, %v652_v17, %v648_v3  ;;  %v753_v39 = vpop.f32.mrf.mxu3 }
 0x60b   :  { %v580_v2 = vsel %vm577_vm12, %v579_v58, %v575_v47  ;;  %v654_v0 = vmul.f32 %v653_v54, %v1727_v9  ;;  %v1094_v9 = vld [vmem:[%s1992_s4 + $0x110] sm:$0xff] }
 0x60c   :  { %v581_v13 = vmul.f32 %v580_v2, %v1731_v11  ;;  %v668_v11 = vsel %vm665_vm1, %v667_v21, %v663_v19  ;;  %769 = vmatpush.msra.mxu1 %v1094_v9 }
 0x60d   :  { %1090 = vmatmul.msk.f32.vlgmr.msra.gmra.mxu0 %vm69_vm0, %v654_v0  ;;  %v669_v23 = vmul.f32 %v668_v11, %v1724_v42 }
 0x60e   :  { %1088 = vmatmul.msk.f32.vlgmr.msrb.gmra.mxu1 %vm69_vm0, %v581_v13 }
 0x60f   :  { %770 = vmatpush.msra.mxu1 %v1093_v22 }
 0x611   :  { %771 = vmatpush.msra.mxu1 %v1092_v27 }
 0x615   :  { %1091 = vmatmul.msk.f32.gmra.mxu0 %vm69_vm0, %v669_v23 }
 0x68a   :  { %v693_v28 = vpop.f32.mrf.mxu0 }
 0x68b   :  { %772 = vmatmul.f32.vlgmr.msra.gmra.mxu1 %v693_v28  ;;  %v1810_v33 = vpop.f32.mrf.mxu1 }
 0x692   :  { %v696_v29 = vpop.f32.mrf.mxu0 }
 0x693   :  { %775 = vmatmul.f32.gmra.mxu1 %v696_v29 }
 0x708   :  { %v773_v42 = vpop.f32.mrf.mxu1 }
 0x709   :  { %v774_v37 = vadd.f32 %v773_v42, %v750_v35 }
 0x70b   :  { %v1815_v15 = vadd.f32 %v1140_v36, %v774_v37 }
 0x70d   :  { %v786_v38 = vmax.f32 %v1815_v15, 0.0  ;;  %v929_v15 = vld [vmem:[%s1998_s8 + $0x70] sm:$0xff] }
 0x70f   :  { %v793_v5 = vmul.f32 %v1141_v30, %v786_v38 }
 0x710   :  { %v776_v40 = vpop.f32.mrf.mxu1 }
 0x711   :  { %v777_v10 = vadd.f32 %v776_v40, %v753_v39  ;;  %795 = vadd.xlane.f32.xlu1 %v793_v5  ;;  %v846_v39 = vmul.f32 0.8, %v842_v24  ;;  %v963_v24 = vld [vmem:[%s2000_s10 + $0x38] sm:$0xff] }
 0x713   :  { %v1823_v43 = vadd.f32 %v1140_v36, %v777_v10 }
 0x715   :  { %v787_v45 = vmax.f32 %v1823_v43, 0.0  ;;  %v930_v43 = vld [vmem:[%s1998_s8 + $0x78] sm:$0xff] }
 0x716   :  { %935 = vmatpush.msrb.mxu0 %v930_v43 }
 0x717   :  { %v794_v46 = vmul.f32 %v1141_v30, %v787_v45 }
 0x718   :  { %936 = vmatpush.msrb.mxu0 %v929_v15 }
 0x719   :  { %797 = vadd.xlane.f32.xlu2 %v794_v46  ;;  %844 = vadd.xlane.f32.xlu1 %v843_v48 }
 0x721   :  { %301 = vadd.xlane.f32.xlu1 %v300_v51 }
 0x784   :  { %v796_v52 = vpop.xlane.xlu1 %795 }
 0x785   :  { %1168 = vtanh.f32 %v796_v52 }
 0x78b   :  { %v1834_v59 = vpop.eup %1168 }
 0x78c   :  { %v798_v55 = vpop.xlane.xlu2 %797  ;;  %v845_v56 = vpop.xlane.xlu1 %844  ;;  %v803_v60 = vsel %vm801_vm3, %v1834_v59, -2.0 }
 0x78d   :  { %1170 = vtanh.f32 %v798_v55  ;;  %v805_v4 = vmul.f32 %v1435_v32, %v803_v60  ;;  %v847_v25 = vmul.f32 0.8, %v845_v56 }
 0x78f   :  { %v807_v1 = vsel %vm69_vm0, %v805_v4, 0.0 }
 0x793   :  { %v1838_v61 = vpop.eup %1170 }
 0x794   :  { %v804_v16 = vsel %vm802_vm4, %v1838_v61, -2.0  ;;  %v302_v62 = vpop.xlane.xlu1 %301 }
 0x795   :  { %v806_v63 = vmul.f32 %v1441_v34, %v804_v16  ;;  %v303_v17 = vmax.f32 %v302_v62, 1.0 }
 0x797   :  { %v808_v58 = vsel %vm69_vm0, %v806_v63, 0.0  ;;  %1172 = vrcp.f32 %v303_v17  ;;  %v315_v12 = vand.u32 2147483648, %v303_v17  ;;  %v313_v14 = vand.u32 2147483647, %v303_v17  ;;  %v924_v63 = vld [vmem:[%s1998_s8 + $0x48] sm:$0xff] }
 0x798   :  { %v809_v3 = vadd.f32 %v808_v58, %v807_v1  ;;  %vm309_vm6 = vweird.f32 %v303_v17  ;;  %v923_v1 = vld [vmem:[%s1998_s8 + $0x40] sm:$0xff]  ;;  %v922_v58 = vld [vmem:[%s1998_s8 + $0x38] sm:$0xff] }
 0x799   :  { %v316_v11 = vor.u32 1.1754944e-38, %v315_v12  ;;  %vm314_vm8 = vcmp.eq.f32.partialorder %v313_v14, 8.507059e+37  ;;  %v917_v14 = vld [vmem:[%s1998_s8 + $0x10] sm:$0xff] }
 0x79a   :  { %v810_v6 = vrot.slane %v809_v3, 4 }
 0x79c   :  { %v811_v7 = vadd.f32 %v810_v6, %v809_v3  ;;  %v921_v3 = vld [vmem:[%s1998_s8 + $0x30] sm:$0xff]  ;;  %v920_v6 = vld [vmem:[%s1998_s8 + $0x28] sm:$0xff] }
 0x79d   :  { %v1173_v47 = vpop.eup %1172 }
 0x79e   :  { %v812_v54 = vrot.slane %v811_v7, 2  ;;  %v305_v8 = vmul.f32 %v1173_v47, %v303_v17  ;;  %vm310_vm5 = vweird.f32 %v1173_v47 }
 0x79f   :  { %vm311_vm7 = vmor %vm309_vm6, %vm310_vm5 }
 0x7a0   :  { %v813_v2 = vadd.f32 %v812_v54, %v811_v7  ;;  %v306_v0 = vsub.f32 1.0, %v305_v8  ;;  %v919_v54 = vld [vmem:[%s1998_s8 + $0x20] sm:$0xff] }
 0x7a2   :  { %v307_v13 = vmul.f32 %v1173_v47, %v306_v0  ;;  %v814_v19 = vrot.slane %v813_v2, 1 }
 0x7a4   :  { %v308_v21 = vadd.f32 %v1173_v47, %v307_v13  ;;  %v815_v9 = vadd.f32 %v814_v19, %v813_v2  ;;  %v918_v2 = vld [vmem:[%s1998_s8 + $0x18] sm:$0xff] }
 0x7a6   :  { %v312_v22 = vsel %vm311_vm7, %v1173_v47, %v308_v21  ;;  %vm817_vm9 = vcmp.gt.f32.partialorder %v815_v9, %v804_v16  ;;  %vm819_vm10 = vcmp.eq.f32.partialorder %v815_v9, %v804_v16  ;;  %vm816_vm13 = vcmp.gt.f32.partialorder %v815_v9, %v803_v60  ;;  %v925_v16 = vld [vmem:[%s1998_s8 + $0x50] sm:$0xff] }
 0x7a7   :  { %v317_v23 = vsel %vm314_vm8, %v316_v11, %v312_v22  ;;  %vm821_vm12 = vmand %vm819_vm10, %vm68_vm11  ;;  %vm818_vm15 = vcmp.eq.f32.partialorder %v815_v9, %v803_v60 }
 0x7a8   :  { %v318_v27 = vmul.f32 %v317_v23, %v298_v50  ;;  %vm823_vm1 = vmor %vm817_vm9, %vm821_vm12  ;;  %v916_v23 = vld [vmem:[%s1998_s8 + $0x8] sm:$0xff] }
 0x7a9   :  { %v1127_v28 = vsel %vm823_vm1, 1.0, %v1180_v31  ;;  %vm820_vm3 = vmand %vm818_vm15, %vm67_vm14 }
 0x7aa   :  { %1089 = vmatmul.msk.f32.vlgmr.msrb.gmra.mxu2 %vm69_vm0, %v318_v27  ;;  %v829_v29 = vmul.f32 %v1127_v28, %v1411_v20  ;;  %vm822_vm4 = vmor %vm816_vm13, %vm820_vm3  ;;  %v915_v27 = vld [vmem:[%s1998_s8] sm:$0xff]  ;;  %v971_v28 = vld [vmem:[%s2000_s10 + $0x78] sm:$0xff] }
 0x7ab   :  { %v1126_v35 = vsel %vm822_vm4, 1.0, %v1180_v31 }
 0x7ac   :  { %v831_v26 = vmul.f32 %v829_v29, %v1712_v49  ;;  %v828_v36 = vmul.f32 %v1126_v35, %v1404_v18  ;;  %v970_v29 = vld [vmem:[%s2000_s10 + $0x70] sm:$0xff]  ;;  %v969_v35 = vld [vmem:[%s2000_s10 + $0x68] sm:$0xff] }
 0x7ae   :  { %v835_v42 = vsel %vm69_vm0, %v831_v26, 0.0  ;;  %v830_v37 = vmul.f32 %v828_v36, %v1712_v49  ;;  %v968_v26 = vld [vmem:[%s2000_s10 + $0x60] sm:$0xff]  ;;  %v967_v36 = vld [vmem:[%s2000_s10 + $0x58] sm:$0xff] }
 0x7af   :  { %836 = vadd.xlane.f32.xlu0 %v835_v42  ;;  %v966_v42 = vld [vmem:[%s2000_s10 + $0x50] sm:$0xff] }
 0x7b0   :  { %v832_v30 = vsel %vm69_vm0, %v830_v37, 0.0  ;;  %v965_v37 = vld [vmem:[%s2000_s10 + $0x48] sm:$0xff] }
 0x7b1   :  { %833 = vadd.xlane.f32.xlu2 %v832_v30  ;;  %v964_v30 = vld [vmem:[%s2000_s10 + $0x40] sm:$0xff] }
 0x822   :  { %v837_v5 = vpop.xlane.xlu0 %836 }
 0x823   :  { %vm849_vm11 = vcmp.lt.f32.partialorder %v837_v5, %v847_v25  ;;  %v962_v25 = vld [vmem:[%s2000_s10 + $0x30] sm:$0xff]  ;;  %v961_v5 = vld [vmem:[%s2000_s10 + $0x28] sm:$0xff] }
 0x824   :  { %v834_v20 = vpop.xlane.xlu2 %833  ;;  %v1129_v40 = vsel %vm849_vm11, 1.0, %v1180_v31 }
 0x825   :  { %vm848_vm14 = vcmp.lt.f32.partialorder %v834_v20, %v846_v39  ;;  %v855_v10 = vmul.f32 %v1129_v40, %v1692_v53  ;;  %v960_v39 = vld [vmem:[%s2000_s10 + $0x20] sm:$0xff]  ;;  %v959_v40 = vld [vmem:[%s2000_s10 + $0x18] sm:$0xff] }
 0x826   :  { %v1128_v18 = vsel %vm848_vm14, 1.0, %v1180_v31 }
 0x827   :  { %v854_v44 = vmul.f32 %v1128_v18, %v1698_v57  ;;  %v857_v49 = vmul.f32 %v1441_v34, %v855_v10  ;;  %v868_v46 = vmul.f32 %v1838_v61, %v855_v10 }
 0x829   :  { %v856_v48 = vmul.f32 %v1435_v32, %v854_v44  ;;  %v867_v50 = vmul.f32 %v1834_v59, %v854_v44  ;;  %v859_v51 = vsel %vm69_vm0, %v857_v49, 0.0  ;;  %v870_v52 = vmul.f32 %v868_v46, %v787_v45  ;;  %v926_v45 = vld [vmem:[%s1998_s8 + $0x58] sm:$0xff]  ;;  %v958_v49 = vld [vmem:[%s2000_s10 + $0x10] sm:$0xff]  ;;  %v957_v46 = vld [vmem:[%s2000_s10 + $0x8] sm:$0xff] }
 0x82b   :  { %v858_v55 = vsel %vm69_vm0, %v856_v48, 0.0  ;;  %908 = vmatpush.msra.mxu2 %v870_v52  ;;  %v869_v31 = vmul.f32 %v867_v50, %v786_v38  ;;  %v928_v38 = vld [vmem:[%s1998_s8 + $0x68] sm:$0xff]  ;;  %v956_v48 = vld [vmem:[%s2000_s10] sm:$0xff] }
 0x82c   :  { %v860_v53 = vadd.f32 %v859_v51, %v858_v55  ;;  %937 = vmatpush.msrb.mxu0 %v928_v38  ;;  %v19_v55 = vstv %s2003_s13 }
 0x82d   :  { %909 = vmatpush.msra.mxu2 %v869_v31  ;;  %v625_v20 = vpop.f32.mrf.mxu2  ;;  %20 = vst [vmem:[#allocation2] sm:$0x1] %v19_v55  ;;  %v1143_v31 = vld [vmem:[%s2001_s11] ss:$0 sm:$0xff] }
 0x82e   :  { %v861_v34 = vrot.slane %v860_v53, 4  ;;  %v626_v10 = vadd.f32 %v625_v20, %v1810_v33  ;;  %v1142_v33 = vld [vmem:[%s1999_s9] ss:$0 sm:$0xff] }
 0x82f   :  { %976 = vmatpush.msrb.mxu2 %v971_v28 }
 0x830   :  { %v862_v57 = vadd.f32 %v861_v34, %v860_v53 }
 0x831   :  { %977 = vmatpush.msrb.mxu2 %v970_v29 }
 0x832   :  { %v863_v56 = vrot.slane %v862_v57, 2 }
 0x833   :  { %978 = vmatpush.msrb.mxu2 %v969_v35 }
 0x834   :  { %v864_v60 = vadd.f32 %v863_v56, %v862_v57  ;;  %v1144_v57 = vld [vmem:[%s2002_s12] ss:$0 sm:$0xff] }
 0x835   :  { %979 = vmatpush.msrb.mxu2 %v968_v26 }
 0x836   :  { %v865_v32 = vrot.slane %v864_v60, 1 }
 0x837   :  { %980 = vmatpush.msrb.mxu2 %v967_v36 }
 0x838   :  { %v866_v61 = vadd.f32 %v865_v32, %v864_v60 }
 0x839   :  { %981 = vmatpush.msrb.mxu2 %v966_v42 }
 0x83a   :  { %v871_v59 = vmul.f32 %v866_v61, %v1721_v41  ;;  %v927_v41 = vld [vmem:[%s1998_s8 + $0x60] sm:$0xff]  ;;  %v1181_v61 = vmov 0  }
 0x83b   :  { %938 = vmatpush.msrb.mxu0 %v927_v41  ;;  %982 = vmatpush.msrb.mxu2 %v965_v37 }
 0x83c   :  { %v872_v4 = vsel %vm299_vm2, %v871_v59, 0.0  ;;  %1134 = vset.pattern.permute.xlu1 %v1181_v61  ;;  %1135 = vset.pattern.permute.xlu0 %v1181_v61 }
 0x83d   :  { %873 = vadd.xlane.f32.xlu2 %v872_v4  ;;  %939 = vmatpush.msrb.mxu0 %v926_v45 }
 0x83e   :  { %983 = vmatpush.msrb.mxu2 %v964_v30 }
 0x83f   :  { %940 = vmatpush.msrb.mxu0 %v925_v16 }
 0x840   :  { %984 = vmatpush.msrb.mxu2 %v963_v24 }
 0x841   :  { %941 = vmatpush.msrb.mxu0 %v924_v63 }
 0x842   :  { %985 = vmatpush.msrb.mxu2 %v962_v25 }
 0x843   :  { %942 = vmatpush.msrb.mxu0 %v923_v1 }
 0x844   :  { %986 = vmatpush.msrb.mxu2 %v961_v5 }
 0x845   :  { %943 = vmatpush.msrb.mxu0 %v922_v58 }
 0x846   :  { %987 = vmatpush.msrb.mxu2 %v960_v39 }
 0x847   :  { %944 = vmatpush.msrb.mxu0 %v921_v3 }
 0x848   :  { %988 = vmatpush.msrb.mxu2 %v959_v40 }
 0x849   :  { %945 = vmatpush.msrb.mxu0 %v920_v6 }
 0x84a   :  { %989 = vmatpush.msrb.mxu2 %v958_v49 }
 0x84b   :  { %946 = vmatpush.msrb.mxu0 %v919_v54 }
 0x84c   :  { %990 = vmatpush.msrb.mxu2 %v957_v46 }
 0x84d   :  { %947 = vmatpush.msrb.mxu0 %v918_v2 }
 0x84e   :  { %991 = vmatpush.msrb.mxu2 %v956_v48 }
 0x84f   :  { %948 = vmatpush.msrb.mxu0 %v917_v14 }
 0x851   :  { %949 = vmatpush.msrb.mxu0 %v916_v23 }
 0x853   :  { %950 = vmatpush.msrb.mxu0 %v915_v27 }
 0x8b0   :  { %v874_v62 = vpop.xlane.xlu2 %873 }
 0x8b1   :  { %v875_v17 = vmax.f32 %v874_v62, 1.0 }
 0x8b3   :  { %1174 = vrcp.f32 %v875_v17  ;;  %v887_v0 = vand.u32 2147483648, %v875_v17  ;;  %v885_v13 = vand.u32 2147483647, %v875_v17  ;;  %vm881_vm5 = vweird.f32 %v875_v17 }
 0x8b5   :  { %v888_v21 = vor.u32 1.1754944e-38, %v887_v0  ;;  %vm886_vm7 = vcmp.eq.f32.partialorder %v885_v13, 8.507059e+37 }
 0x8b9   :  { %v1175_v7 = vpop.eup %1174 }
 0x8ba   :  { %v877_v47 = vmul.f32 %v1175_v7, %v875_v17  ;;  %vm882_vm2 = vweird.f32 %v1175_v7 }
 0x8bb   :  { %vm883_vm6 = vmor %vm881_vm5, %vm882_vm2 }
 0x8bc   :  { %v878_v8 = vsub.f32 1.0, %v877_v47 }
 0x8be   :  { %v879_v12 = vmul.f32 %v1175_v7, %v878_v8 }
 0x8c0   :  { %v880_v19 = vadd.f32 %v1175_v7, %v879_v12 }
 0x8c2   :  { %v884_v9 = vsel %vm883_vm6, %v1175_v7, %v880_v19 }
 0x8c3   :  { %v889_v11 = vsel %vm886_vm7, %v888_v21, %v884_v9 }
 0x8c4   :  { %v890_v22 = vmul.f32 %v889_v11, %v871_v59  ;;  %v1145_v59 = vld [vmem:[#allocation2] ss:$0 sm:$0xff] }
 0x8c6   :  { %1130 = vmatmul.msk.f32.vlgmr.msra.gmra.mxu2 %vm69_vm0, %v890_v22  ;;  %vm1002_vm0 = vcmask 517120  }
 0x949   :  { %v911_v18 = vpop.f32.mrf.mxu2 }
 0x94a   :  { %v914_v44 = vadd.f32 %v911_v18, %v626_v10 }
 0x94c   :  { %951 = vmatmul.f32.vlgmr.msrb.gmra.mxu0 %v914_v44 }
 0x9c9   :  { %v952_v50 = vpop.f32.mrf.mxu0 }
 0x9ca   :  { %v953_v51 = vadd.f32 %v1142_v33, %v952_v50 }
 0x9cc   :  { %v955_v52 = vmax.f32 %v953_v51, 0.0 }
 0x9ce   :  { %992 = vmatmul.f32.vlgmr.msrb.gmra.mxu2 %v955_v52 }
 0xa51   :  { %v993_v53 = vpop.f32.mrf.mxu2 }
 0xa52   :  { %v994_v34 = vadd.f32 %v1143_v31, %v993_v53 }
 0xa54   :  { %v996_v56 = vmax.f32 %v994_v34, 0.0 }
 0xa56   :  { %v1001_v60 = vmul.f32 %v1144_v57, %v996_v56 }
 0xa58   :  { %v1003_v32 = vsel %vm1002_vm0, %v1001_v60, 0.0 }
 0xa59   :  { %1004 = vadd.xlane.f32.xlu0 %v1003_v32 }
 0xacc   :  { %v1005_v4 = vpop.xlane.xlu0 %1004 }
 0xacd   :  { %v1010_v43 = vadd.f32 %v1145_v59, %v1005_v4 }
 0xacf   :  { %v1131_v15 = vmul.f32 -1.442695, %v1010_v43 }
 0xad1   :  { %1176 = vpow2.f32 %v1131_v15 }
 0xad7   :  { %v1177_v38 = vpop.eup %1176 }
 0xad8   :  { %v1014_v41 = vadd.f32 1.0, %v1177_v38 }
 0xada   :  { %1178 = vrcp.f32 %v1014_v41  ;;  %v1026_v63 = vand.u32 2147483648, %v1014_v41  ;;  %v1024_v1 = vand.u32 2147483647, %v1014_v41  ;;  %vm1020_vm9 = vweird.f32 %v1014_v41 }
 0xadc   :  { %v1027_v3 = vor.u32 1.1754944e-38, %v1026_v63  ;;  %vm1025_vm12 = vcmp.eq.f32.partialorder %v1024_v1, 8.507059e+37 }
 0xae0   :  { %v1179_v45 = vpop.eup %1178 }
 0xae1   :  { %v1016_v16 = vmul.f32 %v1179_v45, %v1014_v41  ;;  %vm1021_vm8 = vweird.f32 %v1179_v45 }
 0xae2   :  { %vm1022_vm10 = vmor %vm1020_vm9, %vm1021_vm8 }
 0xae3   :  { %v1017_v62 = vsub.f32 1.0, %v1016_v16 }
 0xae5   :  { %v1018_v17 = vmul.f32 %v1179_v45, %v1017_v62 }
 0xae7   :  { %v1019_v58 = vadd.f32 %v1179_v45, %v1018_v17 }
 0xae9   :  { %v1023_v6 = vsel %vm1022_vm10, %v1179_v45, %v1019_v58 }
 0xaea   :  { %v1028_v7 = vsel %vm1025_vm12, %v1027_v3, %v1023_v6 }
 0xaeb   :  { %1032 = vperm.xlu1 %1134, %v1028_v7  }
 0xb5d   :  { %v1033_v47 = vpop.permute.xlu1 %1032 }
 0xb5e   :  { %1035 = vst [vmem:[%s2004_s14] sm:$0x3] %v1033_v47 }

</bundles_post_ra>
